<compile_context>
chip_gen: v7x
topology: tpu7x:2x2x1
jax: 0.10.0
libtpu: 0.0.40
codegen_flags: <defaults>
</compile_context>

<pallas_src>
import jax
import jax.numpy as jnp
from jax.experimental import pallas as pl
from jax.experimental.pallas import tpu as pltpu


def _round_up(x, m):
    return (x + m - 1) // m * m


def encoder_kernel(obj_ref, cxt_ref, loc_ref,
                   w_obj_ref, b_obj_ref,
                   w_cxt_ref, b_cxt_ref,
                   w_m_obj_ref, w_m_cxt_ref, w_m_loc_ref, b_m_ref,
                   out_ref):
    # Cast the big activations to bf16 in-register (weights already bf16).
    obj = obj_ref[...].astype(jnp.bfloat16)
    cxt = cxt_ref[...].astype(jnp.bfloat16)

    # Branch MLPs (Linear + ReLU; Dropout identity at inference), f32 accumulate.
    h_obj = jnp.dot(obj, w_obj_ref[...],
                    preferred_element_type=jnp.float32) + b_obj_ref[...]
    h_obj = jnp.maximum(h_obj, 0.0).astype(jnp.bfloat16)

    h_cxt = jnp.dot(cxt, w_cxt_ref[...],
                    preferred_element_type=jnp.float32) + b_cxt_ref[...]
    h_cxt = jnp.maximum(h_cxt, 0.0).astype(jnp.bfloat16)

    # Final MLP on concat([h_obj, h_cxt, loc]) expressed as split matmuls.
    # loc path stays f32 (tiny K=8; avoids sub-tile bf16 weight layout).
    y = (jnp.dot(h_obj, w_m_obj_ref[...], preferred_element_type=jnp.float32)
         + jnp.dot(h_cxt, w_m_cxt_ref[...], preferred_element_type=jnp.float32)
         + jnp.dot(loc_ref[...], w_m_loc_ref[...],
                   preferred_element_type=jnp.float32)
         + b_m_ref[...])
    out_ref[...] = jnp.maximum(y, 0.0)


def prepare_encoder_params(params, weight_dtype=jnp.bfloat16):
    """One-time weight prep (hoisted out of the per-call path).

    params: PyTorch-convention weights (out_features, in_features).
    Returns a dict of kernel-ready arrays: [in, out] layout, W_m split by
    concat block, output dim zero-padded to a multiple of 128, bf16 weights
    (except the tiny L-row loc block of W_m, kept f32), f32 biases.
    """
    H = params["w_obj"].shape[0]
    O = params["w_m"].shape[0]
    OP = _round_up(O, 128)
    pad_o = OP - O

    w_m_t = params["w_m"].T.astype(jnp.float32)            # (2H + L, O)
    pad_cols = lambda w: jnp.pad(w, ((0, 0), (0, pad_o)))

    return {
        "w_obj": params["w_obj"].T.astype(weight_dtype),    # (F, H) bf16
        "w_cxt": params["w_cxt"].T.astype(weight_dtype),    # (F, H) bf16
        "b_obj": params["b_obj"].reshape(1, H).astype(jnp.float32),
        "b_cxt": params["b_cxt"].reshape(1, H).astype(jnp.float32),
        "w_m_obj": pad_cols(w_m_t[:H, :].astype(weight_dtype)),       # (H, OP)
        "w_m_cxt": pad_cols(w_m_t[H:2 * H, :].astype(weight_dtype)),  # (H, OP)
        # L=8 rows < bf16 (16,128) sublane tile -> keep this tiny block f32.
        "w_m_loc": pad_cols(w_m_t[2 * H:, :]),                        # (L, OP) f32
        "b_m": jnp.pad(params["b_m"].reshape(1, O).astype(jnp.float32),
                       ((0, 0), (0, pad_o))),                         # (1, OP)
        "out_dim": O,                                                 # python int
    }


def encoder_forward(obj_feat, cxt_feat, loc_feat, prep, *,
                    block_b=512, vmem_limit_bytes=28 << 20):
    """Run the encoder. `prep` comes from prepare_encoder_params (cached).

    Accepts f32 or bf16 activations; bf16 inputs halve the (dominant) input
    DMA bytes with no other change.
    """
    B, F = obj_feat.shape
    L = loc_feat.shape[-1]
    H = prep["w_obj"].shape[1]
    OP = prep["w_m_obj"].shape[1]
    O = prep["out_dim"]

    # Batch tile: multiple of 8 (sublane), capped at block_b, and capped at
    # ceil(B/2) (rounded up to 8) so the grid has >=2 steps whenever B > 8 —
    # this lets dimension_semantics=("parallel",) shard the batch across the
    # two v7x TensorCores instead of collapsing to a single grid step.
    TB = min(block_b, max(8, _round_up(pl.cdiv(B, 2), 8)))
    grid = (pl.cdiv(B, TB),)

    # NOTE: no jnp.pad of the activations — the partial last block is clipped
    # by Pallas (row-wise op: OOB rows never feed valid rows; OOB writes drop).
    row = lambda shape: pl.BlockSpec(shape, lambda i: (i, 0))     # batch-tiled
    const = lambda shape: pl.BlockSpec(shape, lambda i: (0, 0))   # VMEM-resident

    out = pl.pallas_call(
        encoder_kernel,
        out_shape=jax.ShapeDtypeStruct((B, OP), jnp.float32),
        grid=grid,
        in_specs=[
            row((TB, F)), row((TB, F)), row((TB, L)),
            const((F, H)), const((1, H)),
            const((F, H)), const((1, H)),
            const((H, OP)), const((H, OP)), const((L, OP)), const((1, OP)),
        ],
        out_specs=row((TB, OP)),
        compiler_params=pltpu.CompilerParams(
            dimension_semantics=("parallel",),        # megacore sharding on v7x
            vmem_limit_bytes=vmem_limit_bytes,        # TB=512 needs >16 MiB on v5e
        ),
    )(obj_feat, cxt_feat, loc_feat,
      prep["w_obj"], prep["b_obj"], prep["w_cxt"], prep["b_cxt"],
      prep["w_m_obj"], prep["w_m_cxt"], prep["w_m_loc"], prep["b_m"])

    return out[:, :O]


def reference_forward(obj_feat, cxt_feat, loc_feat, params):
    h_obj = jnp.maximum(obj_feat @ params["w_obj"].T + params["b_obj"], 0.0)
    h_cxt = jnp.maximum(cxt_feat @ params["w_cxt"].T + params["b_cxt"], 0.0)
    cat = jnp.concatenate([h_obj, h_cxt, loc_feat], axis=-1)
    return jnp.maximum(cat @ params["w_m"].T + params["b_m"], 0.0)


if __name__ == "__main__":
    # Config: FEATURE_TYPE='pool5' -> feature_dim=2048,
    # HIDDEN_DIM=32, LOC_DIM=8, OUTPUT_DIM=64, Dropout inactive at inference.
    B, FEAT, H, L, O = 2, 2048, 32, 8, 64

    key = jax.random.PRNGKey(0)
    ks = jax.random.split(key, 9)
    scale = 0.02
    params = {
        "w_obj": scale * jax.random.normal(ks[0], (H, FEAT), jnp.float32),
        "b_obj": scale * jax.random.normal(ks[1], (H,), jnp.float32),
        "w_cxt": scale * jax.random.normal(ks[2], (H, FEAT), jnp.float32),
        "b_cxt": scale * jax.random.normal(ks[3], (H,), jnp.float32),
        "w_m":   scale * jax.random.normal(ks[4], (O, 2 * H + L), jnp.float32),
        "b_m":   scale * jax.random.normal(ks[5], (O,), jnp.float32),
    }

    obj_feat = jax.random.normal(ks[6], (B, FEAT), jnp.float32)
    cxt_feat = jax.random.normal(ks[7], (B, FEAT), jnp.float32)
    loc_feat = jax.random.normal(ks[8], (B, L), jnp.float32)

    # One-time weight prep (outside the per-call path).
    prep = jax.tree_util.tree_map(
        lambda x: jax.block_until_ready(x) if isinstance(x, jax.Array) else x,
        prepare_encoder_params(params))

    out = jax.block_until_ready(encoder_forward(obj_feat, cxt_feat, loc_feat, prep))
    ref = reference_forward(obj_feat, cxt_feat, loc_feat, params)
    assert out.shape == (B, O)
    # bf16 weights/activations with f32 accumulation -> loosened tolerance.
    assert jnp.allclose(out, ref, atol=3e-2, rtol=3e-2), "mismatch vs reference (B=2)"

    # Second check: non-divisible batch -> exercises the clipped partial last
    # block (no jnp.pad pass) and a 2-step "parallel" grid.
    B2 = 19
    ks2 = jax.random.split(ks[8], 3)
    obj2 = jax.random.normal(ks2[0], (B2, FEAT), jnp.float32)
    cxt2 = jax.random.normal(ks2[1], (B2, FEAT), jnp.float32)
    loc2 = jax.random.normal(ks2[2], (B2, L), jnp.float32)
    out2 = jax.block_until_ready(encoder_forward(obj2, cxt2, loc2, prep))
    ref2 = reference_forward(obj2, cxt2, loc2, params)
    assert out2.shape == (B2, O)
    assert jnp.allclose(out2, ref2, atol=3e-2, rtol=3e-2), "mismatch vs reference (B=19)"

    print("KERNEL_OK")
</pallas_src>

<mosaic_0001>
module attributes {stable_mosaic.version = 11 : i64} {
  func.func @encoder_kernel(%arg0: i32, %arg1: memref<8x2048xf32, #tpu.memory_space<vmem>>, %arg2: memref<8x2048xf32, #tpu.memory_space<vmem>>, %arg3: memref<8x8xf32, #tpu.memory_space<vmem>>, %arg4: memref<2048x32xbf16, #tpu.memory_space<vmem>>, %arg5: memref<1x32xf32, #tpu.memory_space<vmem>>, %arg6: memref<2048x32xbf16, #tpu.memory_space<vmem>>, %arg7: memref<1x32xf32, #tpu.memory_space<vmem>>, %arg8: memref<32x128xbf16, #tpu.memory_space<vmem>>, %arg9: memref<32x128xbf16, #tpu.memory_space<vmem>>, %arg10: memref<8x128xf32, #tpu.memory_space<vmem>>, %arg11: memref<1x128xf32, #tpu.memory_space<vmem>>, %arg12: memref<8x128xf32, #tpu.memory_space<vmem>>) attributes {dimension_semantics = [#tpu.dimension_semantics<parallel>], iteration_bounds = array<i64: 1>, scalar_prefetch = 0 : i64, scratch_operands = 0 : i64, tpu.core_type = #tpu.core_type<tc>, window_params = [{transform_indices = @transform_0, window_bounds = array<i64: 8, 2048>}, {transform_indices = @transform_1, window_bounds = array<i64: 8, 2048>}, {transform_indices = @transform_2, window_bounds = array<i64: 8, 8>}, {pipeline_mode = #tpu.pipeline_mode<synchronous>, transform_indices = @transform_3, window_bounds = array<i64: 2048, 32>}, {pipeline_mode = #tpu.pipeline_mode<synchronous>, transform_indices = @transform_4, window_bounds = array<i64: 1, 32>}, {pipeline_mode = #tpu.pipeline_mode<synchronous>, transform_indices = @transform_5, window_bounds = array<i64: 2048, 32>}, {pipeline_mode = #tpu.pipeline_mode<synchronous>, transform_indices = @transform_6, window_bounds = array<i64: 1, 32>}, {pipeline_mode = #tpu.pipeline_mode<synchronous>, transform_indices = @transform_7, window_bounds = array<i64: 32, 128>}, {pipeline_mode = #tpu.pipeline_mode<synchronous>, transform_indices = @transform_8, window_bounds = array<i64: 32, 128>}, {pipeline_mode = #tpu.pipeline_mode<synchronous>, transform_indices = @transform_9, window_bounds = array<i64: 8, 128>}, {pipeline_mode = #tpu.pipeline_mode<synchronous>, transform_indices = @transform_10, window_bounds = array<i64: 1, 128>}, {transform_indices = @transform_11, window_bounds = array<i64: 8, 128>}]} {
    %c0 = arith.constant 0 : index
    %c0_0 = arith.constant 0 : index
    %0 = vector.load %arg1[%c0, %c0_0] : memref<8x2048xf32, #tpu.memory_space<vmem>>, vector<8x2048xf32>
    %1 = arith.truncf %0 : vector<8x2048xf32> to vector<8x2048xbf16>
    %c0_1 = arith.constant 0 : index
    %c0_2 = arith.constant 0 : index
    %2 = vector.load %arg2[%c0_1, %c0_2] : memref<8x2048xf32, #tpu.memory_space<vmem>>, vector<8x2048xf32>
    %3 = arith.truncf %2 : vector<8x2048xf32> to vector<8x2048xbf16>
    %c0_3 = arith.constant 0 : index
    %c0_4 = arith.constant 0 : index
    %4 = vector.load %arg4[%c0_3, %c0_4] : memref<2048x32xbf16, #tpu.memory_space<vmem>>, vector<2048x32xbf16>
    %cst = arith.constant dense<0.000000e+00> : vector<8x32xf32>
    %5 = tpu.matmul %1, %4, %cst {dimension_numbers = #tpu.dot_dimension_numbers<[1], [0], [0], [1], [0, 0, 1, 1], [], []>} : vector<8x2048xbf16>, vector<2048x32xbf16>, vector<8x32xf32> -> vector<8x32xf32>
    %c0_5 = arith.constant 0 : index
    %c0_6 = arith.constant 0 : index
    %6 = vector.load %arg5[%c0_5, %c0_6] : memref<1x32xf32, #tpu.memory_space<vmem>>, vector<1x32xf32>
    %7 = vector.broadcast %6 : vector<1x32xf32> to vector<8x32xf32>
    %8 = arith.addf %5, %7 : vector<8x32xf32>
    %cst_7 = arith.constant 0.000000e+00 : f32
    %9 = vector.broadcast %cst_7 : f32 to vector<8x32xf32>
    %10 = arith.maximumf %8, %9 : vector<8x32xf32>
    %11 = arith.truncf %10 : vector<8x32xf32> to vector<8x32xbf16>
    %c0_8 = arith.constant 0 : index
    %c0_9 = arith.constant 0 : index
    %12 = vector.load %arg6[%c0_8, %c0_9] : memref<2048x32xbf16, #tpu.memory_space<vmem>>, vector<2048x32xbf16>
    %cst_10 = arith.constant dense<0.000000e+00> : vector<8x32xf32>
    %13 = tpu.matmul %3, %12, %cst_10 {dimension_numbers = #tpu.dot_dimension_numbers<[1], [0], [0], [1], [0, 0, 1, 1], [], []>} : vector<8x2048xbf16>, vector<2048x32xbf16>, vector<8x32xf32> -> vector<8x32xf32>
    %c0_11 = arith.constant 0 : index
    %c0_12 = arith.constant 0 : index
    %14 = vector.load %arg7[%c0_11, %c0_12] : memref<1x32xf32, #tpu.memory_space<vmem>>, vector<1x32xf32>
    %15 = vector.broadcast %14 : vector<1x32xf32> to vector<8x32xf32>
    %16 = arith.addf %13, %15 : vector<8x32xf32>
    %cst_13 = arith.constant 0.000000e+00 : f32
    %17 = vector.broadcast %cst_13 : f32 to vector<8x32xf32>
    %18 = arith.maximumf %16, %17 : vector<8x32xf32>
    %19 = arith.truncf %18 : vector<8x32xf32> to vector<8x32xbf16>
    %c0_14 = arith.constant 0 : index
    %c0_15 = arith.constant 0 : index
    %20 = vector.load %arg8[%c0_14, %c0_15] : memref<32x128xbf16, #tpu.memory_space<vmem>>, vector<32x128xbf16>
    %cst_16 = arith.constant dense<0.000000e+00> : vector<8x128xf32>
    %21 = tpu.matmul %11, %20, %cst_16 {dimension_numbers = #tpu.dot_dimension_numbers<[1], [0], [0], [1], [0, 0, 1, 1], [], []>} : vector<8x32xbf16>, vector<32x128xbf16>, vector<8x128xf32> -> vector<8x128xf32>
    %c0_17 = arith.constant 0 : index
    %c0_18 = arith.constant 0 : index
    %22 = vector.load %arg9[%c0_17, %c0_18] : memref<32x128xbf16, #tpu.memory_space<vmem>>, vector<32x128xbf16>
    %cst_19 = arith.constant dense<0.000000e+00> : vector<8x128xf32>
    %23 = tpu.matmul %19, %22, %cst_19 {dimension_numbers = #tpu.dot_dimension_numbers<[1], [0], [0], [1], [0, 0, 1, 1], [], []>} : vector<8x32xbf16>, vector<32x128xbf16>, vector<8x128xf32> -> vector<8x128xf32>
    %24 = arith.addf %21, %23 : vector<8x128xf32>
    %c0_20 = arith.constant 0 : index
    %c0_21 = arith.constant 0 : index
    %25 = vector.load %arg3[%c0_20, %c0_21] : memref<8x8xf32, #tpu.memory_space<vmem>>, vector<8x8xf32>
    %c0_22 = arith.constant 0 : index
    %c0_23 = arith.constant 0 : index
    %26 = vector.load %arg10[%c0_22, %c0_23] : memref<8x128xf32, #tpu.memory_space<vmem>>, vector<8x128xf32>
    %cst_24 = arith.constant dense<0.000000e+00> : vector<8x128xf32>
    %27 = tpu.matmul %25, %26, %cst_24 {dimension_numbers = #tpu.dot_dimension_numbers<[1], [0], [0], [1], [0, 0, 1, 1], [], []>} : vector<8x8xf32>, vector<8x128xf32>, vector<8x128xf32> -> vector<8x128xf32>
    %28 = arith.addf %24, %27 : vector<8x128xf32>
    %c0_25 = arith.constant 0 : index
    %c0_26 = arith.constant 0 : index
    %29 = vector.load %arg11[%c0_25, %c0_26] : memref<1x128xf32, #tpu.memory_space<vmem>>, vector<1x128xf32>
    %30 = vector.broadcast %29 : vector<1x128xf32> to vector<8x128xf32>
    %31 = arith.addf %28, %30 : vector<8x128xf32>
    %cst_27 = arith.constant 0.000000e+00 : f32
    %32 = vector.broadcast %cst_27 : f32 to vector<8x128xf32>
    %33 = arith.maximumf %31, %32 : vector<8x128xf32>
    %c0_28 = arith.constant 0 : index
    %c0_29 = arith.constant 0 : index
    %34 = vector.load %arg12[%c0_28, %c0_29] : memref<8x128xf32, #tpu.memory_space<vmem>>, vector<8x128xf32>
    tpu.vector_store %arg12[%c0_28, %c0_29], %33 {strides = array<i32>} : memref<8x128xf32, #tpu.memory_space<vmem>>, vector<8x128xf32>,
    return
  }
  func.func @transform_0(%arg0: i32) -> (i32, i32) {
    %c0_i32 = arith.constant 0 : i32
    %c0_i32_0 = arith.constant 0 : i32
    return %arg0, %c0_i32 : i32, i32
  }
  func.func @transform_1(%arg0: i32) -> (i32, i32) {
    %c0_i32 = arith.constant 0 : i32
    %c0_i32_0 = arith.constant 0 : i32
    return %arg0, %c0_i32 : i32, i32
  }
  func.func @transform_2(%arg0: i32) -> (i32, i32) {
    %c0_i32 = arith.constant 0 : i32
    %c0_i32_0 = arith.constant 0 : i32
    return %arg0, %c0_i32 : i32, i32
  }
  func.func @transform_3(%arg0: i32) -> (i32, i32) {
    %c0_i32 = arith.constant 0 : i32
    %c0_i32_0 = arith.constant 0 : i32
    %c0_i32_1 = arith.constant 0 : i32
    return %c0_i32, %c0_i32_0 : i32, i32
  }
  func.func @transform_4(%arg0: i32) -> (i32, i32) {
    %c0_i32 = arith.constant 0 : i32
    %c0_i32_0 = arith.constant 0 : i32
    %c0_i32_1 = arith.constant 0 : i32
    return %c0_i32, %c0_i32_0 : i32, i32
  }
  func.func @transform_5(%arg0: i32) -> (i32, i32) {
    %c0_i32 = arith.constant 0 : i32
    %c0_i32_0 = arith.constant 0 : i32
    %c0_i32_1 = arith.constant 0 : i32
    return %c0_i32, %c0_i32_0 : i32, i32
  }
  func.func @transform_6(%arg0: i32) -> (i32, i32) {
    %c0_i32 = arith.constant 0 : i32
    %c0_i32_0 = arith.constant 0 : i32
    %c0_i32_1 = arith.constant 0 : i32
    return %c0_i32, %c0_i32_0 : i32, i32
  }
  func.func @transform_7(%arg0: i32) -> (i32, i32) {
    %c0_i32 = arith.constant 0 : i32
    %c0_i32_0 = arith.constant 0 : i32
    %c0_i32_1 = arith.constant 0 : i32
    return %c0_i32, %c0_i32_0 : i32, i32
  }
  func.func @transform_8(%arg0: i32) -> (i32, i32) {
    %c0_i32 = arith.constant 0 : i32
    %c0_i32_0 = arith.constant 0 : i32
    %c0_i32_1 = arith.constant 0 : i32
    return %c0_i32, %c0_i32_0 : i32, i32
  }
  func.func @transform_9(%arg0: i32) -> (i32, i32) {
    %c0_i32 = arith.constant 0 : i32
    %c0_i32_0 = arith.constant 0 : i32
    %c0_i32_1 = arith.constant 0 : i32
    return %c0_i32, %c0_i32_0 : i32, i32
  }
  func.func @transform_10(%arg0: i32) -> (i32, i32) {
    %c0_i32 = arith.constant 0 : i32
    %c0_i32_0 = arith.constant 0 : i32
    %c0_i32_1 = arith.constant 0 : i32
    return %c0_i32, %c0_i32_0 : i32, i32
  }
  func.func @transform_11(%arg0: i32) -> (i32, i32) {
    %c0_i32 = arith.constant 0 : i32
    %c0_i32_0 = arith.constant 0 : i32
    return %arg0, %c0_i32 : i32, i32
  }
}

</mosaic_0001>

<bundles_post_ra>
// kernel: tpu_custom_call.1
= control target key start
LH: loop header
LB: loop body
LE: loop exit
PB: predicated region body
PF: predicated region fallthrough
CT: control target
= control target key end

     0   :  { %16 = vsyncpa [#allocation3], 0  ;;  %v79_v29 = vlaneseq  ;;  %v4322_v37 = vmov 1983009808   ;;  %vm4324_vm0 = vmmov 0   ;;  %vm3182_vm1 = vcmask 261120   ;;  %s5338_s0 = inlined_call_operand.vmem [shape: f32[2,2048], index: 0, kind: input, shape index: {}]   ;;  %s5339_s1 = inlined_call_operand.vmem [shape: f32[2,2048], index: 1, kind: input, shape index: {}]   ;;  %s5340_s2 = inlined_call_operand.vmem [shape: f32[2,8], index: 2, kind: input, shape index: {}]   ;;  %s5341_s3 = inlined_call_operand.vmem [shape: bf16[2048,32], index: 3, kind: input, shape index: {}]   ;;  %s5342_s4 = inlined_call_operand.vmem [shape: f32[1,32], index: 4, kind: input, shape index: {}]   ;;  %s5343_s5 = inlined_call_operand.vmem [shape: bf16[2048,32], index: 5, kind: input, shape index: {}]   ;;  %s5344_s6 = inlined_call_operand.vmem [shape: f32[1,32], index: 6, kind: input, shape index: {}]   ;;  %s5345_s7 = inlined_call_operand.vmem [shape: bf16[32,128], index: 7, kind: input, shape index: {}]   ;;  %s5346_s8 = inlined_call_operand.vmem [shape: bf16[32,128], index: 8, kind: input, shape index: {}]   ;;  %s5347_s9 = inlined_call_operand.vmem [shape: f32[8,128], index: 9, kind: input, shape index: {}]   ;;  %s5348_s10 = inlined_call_operand.vmem [shape: f32[1,128], index: 10, kind: input, shape index: {}]   ;;  %s5349_s11 = inlined_call_operand.hbm [shape: f32[2,128], index: 11, kind: output, shape index: {}]  }
   0x1   :  { %v4038_v0 = vld [vmem:[%s5341_s3 + $0x40] sm:$0xff]   ;;  %v4042_v4 = vld [vmem:[%s5341_s3 + $0x48] sm:$0xff]   ;;  %v4046_v8 = vld [vmem:[%s5341_s3 + $0x50] sm:$0xff]   ;;  %v77_v38 = vunpack.c.l.s4 %v4322_v37  ;;  %vm3283_vm2 = vcmask 64512  }
   0x2   :  { %v4039_v1 = vld [vmem:[%s5341_s3 + $0xc0] sm:$0xff]   ;;  %3650 = vmatprep.subr.bf16.mxu0 %v4038_v0  ;;  %v4043_v5 = vld [vmem:[%s5341_s3 + $0xc8] sm:$0xff]   ;;  %v4047_v9 = vld [vmem:[%s5341_s3 + $0xd0] sm:$0xff]   ;;  %v80_v39 = vshrl.u32 %v79_v29, 7 }
   0x3   :  { %v4040_v2 = vld [vmem:[%s5341_s3] sm:$0xff]   ;;  %3672 = vmatprep.subr.bf16.mxu1 %v4039_v1  ;;  %v4044_v6 = vld [vmem:[%s5341_s3 + $0x8] sm:$0xff]   ;;  %v4048_v10 = vld [vmem:[%s5341_s3 + $0x10] sm:$0xff]   ;;  %v78_v43 = vunpack.c.0.s8 %v77_v38 }
   0x4   :  { %v4041_v3 = vld [vmem:[%s5341_s3 + $0x80] sm:$0xff]   ;;  %3651 = vmatpush3.bf16.msra.mxu0 %v4040_v2  ;;  %v4045_v7 = vld [vmem:[%s5341_s3 + $0x88] sm:$0xff]   ;;  %v4049_v11 = vld [vmem:[%s5341_s3 + $0x90] sm:$0xff]  }
   0x5   :  { %3673 = vmatpush3.bf16.msra.mxu1 %v4041_v3  ;;  %3652 = vmatprep.subr.bf16.mxu0 %v4042_v4  ;;  %v4050_v12 = vld [vmem:[%s5341_s3 + $0x58] sm:$0xff]   ;;  %v4054_v16 = vld [vmem:[%s5341_s3 + $0x60] sm:$0xff]   ;;  %v4058_v20 = vld [vmem:[%s5341_s3 + $0x68] sm:$0xff]   ;;  %v4502_v47 = vsub.s32 %v78_v43, %v80_v39 }
   0x6   :  { %3674 = vmatprep.subr.bf16.mxu1 %v4043_v5  ;;  %v4051_v13 = vld [vmem:[%s5341_s3 + $0xd8] sm:$0xff]   ;;  %v4055_v17 = vld [vmem:[%s5341_s3 + $0xe0] sm:$0xff]   ;;  %v4059_v21 = vld [vmem:[%s5341_s3 + $0xe8] sm:$0xff]  }
   0x7   :  { %v4052_v14 = vld [vmem:[%s5341_s3 + $0x18] sm:$0xff]   ;;  %v4056_v18 = vld [vmem:[%s5341_s3 + $0x20] sm:$0xff]   ;;  %v4060_v22 = vld [vmem:[%s5341_s3 + $0x28] sm:$0xff]  }
   0x8   :  { %3653 = vmatpush3.bf16.msra.mxu0 %v4044_v6  ;;  %v4053_v15 = vld [vmem:[%s5341_s3 + $0x98] sm:$0xff]   ;;  %v4057_v19 = vld [vmem:[%s5341_s3 + $0xa0] sm:$0xff]   ;;  %v4061_v23 = vld [vmem:[%s5341_s3 + $0xa8] sm:$0xff]  }
   0x9   :  { %3675 = vmatpush3.bf16.msra.mxu1 %v4045_v7  ;;  %3654 = vmatprep.subr.bf16.mxu0 %v4046_v8  ;;  %v4062_v24 = vld [vmem:[%s5341_s3 + $0x70] sm:$0xff]   ;;  %v4066_v28 = vld [vmem:[%s5341_s3 + $0x78] sm:$0xff]   ;;  %v40_v33 = vld [vmem:[%s5338_s0] sm:$0xff] }
   0xa   :  { %3676 = vmatprep.subr.bf16.mxu1 %v4047_v9  ;;  %v4063_v25 = vld [vmem:[%s5341_s3 + $0xf0] sm:$0xff]   ;;  %v4067_v30 = vld [vmem:[%s5341_s3 + $0xf8] sm:$0xff]   ;;  %v44_v34 = vld [vmem:[%s5338_s0 + $0x20] sm:$0xff] }
   0xb   :  { %v4064_v26 = vld [vmem:[%s5341_s3 + $0x30] sm:$0xff]   ;;  %v4068_v31 = vld [vmem:[%s5341_s3 + $0x38] sm:$0xff]   ;;  %v48_v35 = vld [vmem:[%s5338_s0 + $0x40] sm:$0xff]  ;;  %v72_v40 = vcombine.low %v40_v33, %v44_v34  ;;  %v73_v44 = vcombine.high %v40_v33, %v44_v34 }
   0xc   :  { %3655 = vmatpush3.bf16.msra.mxu0 %v4048_v10  ;;  %v4065_v27 = vld [vmem:[%s5341_s3 + $0xb0] sm:$0xff]   ;;  %v4069_v32 = vld [vmem:[%s5341_s3 + $0xb8] sm:$0xff]   ;;  %v52_v36 = vld [vmem:[%s5338_s0 + $0x60] sm:$0xff] }
   0xd   :  { %3677 = vmatpush3.bf16.msra.mxu1 %v4049_v11  ;;  %3656 = vmatprep.subr.bf16.mxu0 %v4050_v12  ;;  %v4070_v41 = vld [vmem:[%s5341_s3 + $0x140] sm:$0xff]   ;;  %v74_v42 = vcombine.low %v48_v35, %v52_v36  ;;  %v75_v45 = vcombine.high %v48_v35, %v52_v36  ;;  %v82_v48 = vrot.slane %v72_v40, %v4502_v47  ;;  %v4074_v62 = vld [vmem:[%s5341_s3 + $0x148] sm:$0xff]   ;;  %v4078_v2 = vld [vmem:[%s5341_s3 + $0x150] sm:$0xff]  }
   0xe   :  { %3678 = vmatprep.subr.bf16.mxu1 %v4051_v13  ;;  %v4071_v46 = vld [vmem:[%s5341_s3 + $0x1c0] sm:$0xff]   ;;  %v89_v50 = vrot.slane %v73_v44, %v4502_v47  ;;  %v4075_v63 = vld [vmem:[%s5341_s3 + $0x1c8] sm:$0xff]   ;;  %v4079_v3 = vld [vmem:[%s5341_s3 + $0x1d0] sm:$0xff]  }
   0xf   :  { %v96_v49 = vrot.slane %v74_v42, %v4502_v47  ;;  %v103_v51 = vrot.slane %v75_v45, %v4502_v47  ;;  %v4072_v56 = vld [vmem:[%s5341_s3 + $0x100] sm:$0xff]   ;;  %v4076_v0 = vld [vmem:[%s5341_s3 + $0x108] sm:$0xff]   ;;  %v4080_v4 = vld [vmem:[%s5341_s3 + $0x110] sm:$0xff]  }
  0x10   :  { %3657 = vmatpush3.bf16.msra.mxu0 %v4052_v14  ;;  %v4073_v57 = vld [vmem:[%s5341_s3 + $0x180] sm:$0xff]   ;;  %v4077_v1 = vld [vmem:[%s5341_s3 + $0x188] sm:$0xff]   ;;  %v4081_v5 = vld [vmem:[%s5341_s3 + $0x190] sm:$0xff]  }
  0x11   :  { %3679 = vmatpush3.bf16.msra.mxu1 %v4053_v15  ;;  %3658 = vmatprep.subr.bf16.mxu0 %v4054_v16  ;;  %v105_v52 = vcombine.high %v82_v48, %v96_v49  ;;  %v107_v53 = vcombine.high %v89_v50, %v103_v51  ;;  %v104_v54 = vcombine.low %v82_v48, %v96_v49  ;;  %v4082_v6 = vld [vmem:[%s5341_s3 + $0x158] sm:$0xff]   ;;  %v4086_v10 = vld [vmem:[%s5341_s3 + $0x160] sm:$0xff]   ;;  %v4090_v14 = vld [vmem:[%s5341_s3 + $0x168] sm:$0xff]  }
  0x12   :  { %3680 = vmatprep.subr.bf16.mxu1 %v4055_v17  ;;  %v106_v55 = vcombine.low %v89_v50, %v103_v51  ;;  %v4083_v7 = vld [vmem:[%s5341_s3 + $0x1d8] sm:$0xff]   ;;  %v4087_v11 = vld [vmem:[%s5341_s3 + $0x1e0] sm:$0xff]   ;;  %v4091_v15 = vld [vmem:[%s5341_s3 + $0x1e8] sm:$0xff]  }
  0x13   :  { %v233_v58 = vpack.c.bf16 %v105_v52, %v105_v52  ;;  %v235_v59 = vpack.c.bf16 %v107_v53, %v107_v53  ;;  %v232_v60 = vpack.c.bf16 %v104_v54, %v104_v54  ;;  %v4084_v8 = vld [vmem:[%s5341_s3 + $0x118] sm:$0xff]   ;;  %v4088_v12 = vld [vmem:[%s5341_s3 + $0x120] sm:$0xff]   ;;  %v4092_v16 = vld [vmem:[%s5341_s3 + $0x128] sm:$0xff]  }
  0x14   :  { %3659 = vmatpush3.bf16.msra.mxu0 %v4056_v18  ;;  %v234_v61 = vpack.c.bf16 %v106_v55, %v106_v55  ;;  %v4085_v9 = vld [vmem:[%s5341_s3 + $0x198] sm:$0xff]   ;;  %v4089_v13 = vld [vmem:[%s5341_s3 + $0x1a0] sm:$0xff]   ;;  %v4093_v17 = vld [vmem:[%s5341_s3 + $0x1a8] sm:$0xff]  }
  0x15   :  { %3681 = vmatpush3.bf16.msra.mxu1 %v4057_v19  ;;  %3660 = vmatprep.subr.bf16.mxu0 %v4058_v20  ;;  %v4094_v18 = vld [vmem:[%s5341_s3 + $0x170] sm:$0xff]   ;;  %v4101_v36 = vld [vmem:[%s5341_s3 + $0x1b8] sm:$0xff]   ;;  %v4102_v40 = vld [vmem:[%s5341_s3 + $0x240] sm:$0xff]  }
  0x16   :  { %3682 = vmatprep.subr.bf16.mxu1 %v4059_v21  ;;  %1519 = vmatprep.mubr.bf16.mxu0 %v233_v58  ;;  %v4095_v19 = vld [vmem:[%s5341_s3 + $0x1f0] sm:$0xff]   ;;  %v4103_v43 = vld [vmem:[%s5341_s3 + $0x2c0] sm:$0xff]   ;;  %v4106_v51 = vld [vmem:[%s5341_s3 + $0x248] sm:$0xff]  }
  0x17   :  { %1559 = vmatprep.mubr.bf16.mxu1 %v235_v59  ;;  %v4096_v20 = vld [vmem:[%s5341_s3 + $0x130] sm:$0xff]   ;;  %v4104_v45 = vld [vmem:[%s5341_s3 + $0x200] sm:$0xff]   ;;  %v4107_v52 = vld [vmem:[%s5341_s3 + $0x2c8] sm:$0xff]  }
  0x18   :  { %3661 = vmatpush3.bf16.msra.mxu0 %v4060_v22  ;;  %v4097_v21 = vld [vmem:[%s5341_s3 + $0x1b0] sm:$0xff]   ;;  %v41_v22 = vld [vmem:[%s5338_s0 + $0x8] sm:$0xff]  ;;  %v4105_v50 = vld [vmem:[%s5341_s3 + $0x280] sm:$0xff]  }
  0x19   :  { %3683 = vmatpush3.bf16.msra.mxu1 %v4061_v23  ;;  %3662 = vmatprep.subr.bf16.mxu0 %v4062_v24  ;;  %v45_v23 = vld [vmem:[%s5338_s0 + $0x28] sm:$0xff]  ;;  %v4110_v55 = vld [vmem:[%s5341_s3 + $0x250] sm:$0xff]   ;;  %v4114_v59 = vld [vmem:[%s5341_s3 + $0x258] sm:$0xff]  }
  0x1a   :  { %3684 = vmatprep.subr.bf16.mxu1 %v4063_v25  ;;  %v49_v24 = vld [vmem:[%s5338_s0 + $0x48] sm:$0xff]  ;;  %v109_v29 = vcombine.high %v41_v22, %v45_v23  ;;  %v4113_v58 = vld [vmem:[%s5341_s3 + $0x290] sm:$0xff]  }
  0x1b   :  { %v53_v25 = vld [vmem:[%s5338_s0 + $0x68] sm:$0xff] }
  0x1c   :  { %3663 = vmatpush3.bf16.msra.mxu0 %v4064_v26  ;;  %v4098_v26 = vld [vmem:[%s5341_s3 + $0x178] sm:$0xff]   ;;  %v125_v35 = vrot.slane %v109_v29, %v4502_v47  ;;  %v4108_v53 = vld [vmem:[%s5341_s3 + $0x208] sm:$0xff]  }
  0x1d   :  { %3685 = vmatpush3.bf16.msra.mxu1 %v4065_v27  ;;  %3664 = vmatprep.subr.bf16.mxu0 %v4066_v28  ;;  %v108_v27 = vcombine.low %v41_v22, %v45_v23  ;;  %v110_v28 = vcombine.low %v49_v24, %v53_v25  ;;  %v4109_v54 = vld [vmem:[%s5341_s3 + $0x288] sm:$0xff]   ;;  %v4133_v22 = vld [vmem:[%s5341_s3 + $0x2b8] sm:$0xff]  }
  0x1e   :  { %3686 = vmatprep.subr.bf16.mxu1 %v4067_v30  ;;  %v4099_v30 = vld [vmem:[%s5341_s3 + $0x1f8] sm:$0xff]  }
  0x1f   :  { %v118_v33 = vrot.slane %v108_v27, %v4502_v47  ;;  %v132_v34 = vrot.slane %v110_v28, %v4502_v47  ;;  %v4134_v27 = vld [vmem:[%s5341_s3 + $0x340] sm:$0xff]  }
  0x20   :  { %3665 = vmatpush3.bf16.msra.mxu0 %v4068_v31  ;;  %v111_v31 = vcombine.high %v49_v24, %v53_v25  ;;  %v4135_v28 = vld [vmem:[%s5341_s3 + $0x3c0] sm:$0xff]  }
  0x21   :  { %3687 = vmatpush3.bf16.msra.mxu1 %v4069_v32  ;;  %3694 = vmatprep.subr.bf16.mxu0 %v4070_v41  ;;  %v4100_v32 = vld [vmem:[%s5341_s3 + $0x138] sm:$0xff]   ;;  %v141_v38 = vcombine.high %v118_v33, %v132_v34  ;;  %v140_v39 = vcombine.low %v118_v33, %v132_v34  ;;  %v4136_v33 = vld [vmem:[%s5341_s3 + $0x300] sm:$0xff]  }
  0x22   :  { %3716 = vmatprep.subr.bf16.mxu1 %v4071_v46  ;;  %v139_v37 = vrot.slane %v111_v31, %v4502_v47  ;;  %v4137_v34 = vld [vmem:[%s5341_s3 + $0x380] sm:$0xff]  }
  0x23   :  { %1520 = vmatmul.mubr.bf16.vlgmr.msra.gmra.mrb[0].mxu0 %v232_v60  ;;  %v237_v44 = vpack.c.bf16 %v141_v38, %v141_v38  ;;  %v236_v48 = vpack.c.bf16 %v140_v39, %v140_v39  ;;  %v4115_v60 = vld [vmem:[%s5341_s3 + $0x2d8] sm:$0xff]   ;;  %v4138_v38 = vld [vmem:[%s5341_s3 + $0x348] sm:$0xff]  }
  0x24   :  { %1560 = vmatmul.mubr.bf16.vlgmr.msra.gmra.mrb[0].mxu1 %v234_v61  ;;  %3695 = vmatpush3.bf16.msra.mxu0 %v4072_v56  ;;  %v143_v41 = vcombine.high %v125_v35, %v139_v37  ;;  %v142_v42 = vcombine.low %v125_v35, %v139_v37  ;;  %v4111_v56 = vld [vmem:[%s5341_s3 + $0x2d0] sm:$0xff]   ;;  %v4116_v61 = vld [vmem:[%s5341_s3 + $0x218] sm:$0xff]  }
  0x25   :  { %3717 = vmatpush3.bf16.msra.mxu1 %v4073_v57  ;;  %3696 = vmatprep.subr.bf16.mxu0 %v4074_v62  ;;  %v4112_v57 = vld [vmem:[%s5341_s3 + $0x210] sm:$0xff]   ;;  %v4117_v62 = vld [vmem:[%s5341_s3 + $0x298] sm:$0xff]  }
  0x26   :  { %3718 = vmatprep.subr.bf16.mxu1 %v4075_v63  ;;  %v239_v46 = vpack.c.bf16 %v143_v41, %v143_v41  ;;  %v238_v49 = vpack.c.bf16 %v142_v42, %v142_v42  ;;  %1599 = vmatprep.mubr.bf16.mxu0 %v237_v44  ;;  %v4118_v63 = vld [vmem:[%s5341_s3 + $0x260] sm:$0xff]   ;;  %v4140_v41 = vld [vmem:[%s5341_s3 + $0x308] sm:$0xff]   ;;  %v4143_v44 = vld [vmem:[%s5341_s3 + $0x3d0] sm:$0xff]  }
  0x27   :  { %v4141_v42 = vld [vmem:[%s5341_s3 + $0x388] sm:$0xff]  }
  0x28   :  { %3697 = vmatpush3.bf16.msra.mxu0 %v4076_v0  ;;  %1639 = vmatprep.mubr.bf16.mxu1 %v239_v46  ;;  %v4119_v0 = vld [vmem:[%s5341_s3 + $0x2e0] sm:$0xff]   ;;  %v4145_v46 = vld [vmem:[%s5341_s3 + $0x390] sm:$0xff]  }
  0x29   :  { %3719 = vmatpush3.bf16.msra.mxu1 %v4077_v1  ;;  %3698 = vmatprep.subr.bf16.mxu0 %v4078_v2  ;;  %v4120_v1 = vld [vmem:[%s5341_s3 + $0x220] sm:$0xff]  }
  0x2a   :  { %3720 = vmatprep.subr.bf16.mxu1 %v4079_v3  ;;  %v4121_v2 = vld [vmem:[%s5341_s3 + $0x2a0] sm:$0xff]   ;;  %v4122_v3 = vld [vmem:[%s5341_s3 + $0x268] sm:$0xff]  }
  0x2c   :  { %3699 = vmatpush3.bf16.msra.mxu0 %v4080_v4  ;;  %v4123_v4 = vld [vmem:[%s5341_s3 + $0x2e8] sm:$0xff]  }
  0x2d   :  { %3721 = vmatpush3.bf16.msra.mxu1 %v4081_v5  ;;  %3700 = vmatprep.subr.bf16.mxu0 %v4082_v6  ;;  %v4124_v5 = vld [vmem:[%s5341_s3 + $0x228] sm:$0xff]  }
  0x2e   :  { %3722 = vmatprep.subr.bf16.mxu1 %v4083_v7  ;;  %v4125_v6 = vld [vmem:[%s5341_s3 + $0x2a8] sm:$0xff]   ;;  %v4126_v7 = vld [vmem:[%s5341_s3 + $0x270] sm:$0xff]  }
  0x30   :  { %3701 = vmatpush3.bf16.msra.mxu0 %v4084_v8  ;;  %v4127_v8 = vld [vmem:[%s5341_s3 + $0x2f0] sm:$0xff]  }
  0x31   :  { %3723 = vmatpush3.bf16.msra.mxu1 %v4085_v9  ;;  %3702 = vmatprep.subr.bf16.mxu0 %v4086_v10  ;;  %v4128_v9 = vld [vmem:[%s5341_s3 + $0x230] sm:$0xff]  }
  0x32   :  { %3724 = vmatprep.subr.bf16.mxu1 %v4087_v11  ;;  %v4129_v10 = vld [vmem:[%s5341_s3 + $0x2b0] sm:$0xff]   ;;  %v4130_v11 = vld [vmem:[%s5341_s3 + $0x278] sm:$0xff]  }
  0x34   :  { %3703 = vmatpush3.bf16.msra.mxu0 %v4088_v12  ;;  %v4131_v12 = vld [vmem:[%s5341_s3 + $0x2f8] sm:$0xff]  }
  0x35   :  { %3725 = vmatpush3.bf16.msra.mxu1 %v4089_v13  ;;  %3704 = vmatprep.subr.bf16.mxu0 %v4090_v14  ;;  %v42_v13 = vld [vmem:[%s5338_s0 + $0x10] sm:$0xff] }
  0x36   :  { %3726 = vmatprep.subr.bf16.mxu1 %v4091_v15  ;;  %v46_v14 = vld [vmem:[%s5338_s0 + $0x30] sm:$0xff] }
  0x37   :  { %v50_v15 = vld [vmem:[%s5338_s0 + $0x50] sm:$0xff] }
  0x38   :  { %3705 = vmatpush3.bf16.msra.mxu0 %v4092_v16  ;;  %v54_v16 = vld [vmem:[%s5338_s0 + $0x70] sm:$0xff] }
  0x39   :  { %3727 = vmatpush3.bf16.msra.mxu1 %v4093_v17  ;;  %3706 = vmatprep.subr.bf16.mxu0 %v4094_v18  ;;  %v144_v17 = vcombine.low %v42_v13, %v46_v14  ;;  %v145_v18 = vcombine.high %v42_v13, %v46_v14 }
  0x3a   :  { %3728 = vmatprep.subr.bf16.mxu1 %v4095_v19  ;;  %v4132_v19 = vld [vmem:[%s5341_s3 + $0x238] sm:$0xff]  }
  0x3b   :  { %v154_v23 = vrot.slane %v144_v17, %v4502_v47  ;;  %v161_v24 = vrot.slane %v145_v18, %v4502_v47  ;;  %v4167_v17 = vld [vmem:[%s5343_s5 + $0xc0] sm:$0xff]  }
  0x3c   :  { %3707 = vmatpush3.bf16.msra.mxu0 %v4096_v20  ;;  %v146_v20 = vcombine.low %v50_v15, %v54_v16 }
  0x3d   :  { %3729 = vmatpush3.bf16.msra.mxu1 %v4097_v21  ;;  %3708 = vmatprep.subr.bf16.mxu0 %v4098_v26  ;;  %v147_v21 = vcombine.high %v50_v15, %v54_v16  ;;  %v4166_v16 = vld [vmem:[%s5343_s5 + $0x40] sm:$0xff]  }
  0x3e   :  { %3730 = vmatprep.subr.bf16.mxu1 %v4099_v30  ;;  %v168_v25 = vrot.slane %v146_v20, %v4502_v47 }
  0x3f   :  { %v175_v26 = vrot.slane %v147_v21, %v4502_v47 }
  0x40   :  { %3709 = vmatpush3.bf16.msra.mxu0 %v4100_v32  ;;  %v177_v29 = vcombine.high %v154_v23, %v168_v25  ;;  %v176_v31 = vcombine.low %v154_v23, %v168_v25  ;;  %v4169_v23 = vld [vmem:[%s5343_s5 + $0x80] sm:$0xff]  }
  0x41   :  { %3731 = vmatpush3.bf16.msra.mxu1 %v4101_v36  ;;  %3738 = vmatprep.subr.bf16.mxu0 %v4102_v40  ;;  %v179_v30 = vcombine.high %v161_v24, %v175_v26  ;;  %v178_v32 = vcombine.low %v161_v24, %v175_v26  ;;  %v4139_v40 = vld [vmem:[%s5341_s3 + $0x3c8] sm:$0xff]  }
  0x42   :  { %3760 = vmatprep.subr.bf16.mxu1 %v4103_v43  ;;  %v241_v35 = vpack.c.bf16 %v177_v29, %v177_v29  ;;  %v240_v37 = vpack.c.bf16 %v176_v31, %v176_v31  ;;  %v4142_v43 = vld [vmem:[%s5341_s3 + $0x350] sm:$0xff]   ;;  %v4171_v29 = vld [vmem:[%s5343_s5 + $0xc8] sm:$0xff]  }
  0x43   :  { %1600 = vmatmul.mubr.bf16.vlgmr.msra.gmra.mrb[4].mxu0 %v236_v48  ;;  %v243_v36 = vpack.c.bf16 %v179_v30, %v179_v30  ;;  %v242_v39 = vpack.c.bf16 %v178_v32, %v178_v32  ;;  %v4146_v48 = vld [vmem:[%s5341_s3 + $0x358] sm:$0xff]   ;;  %v4172_v30 = vld [vmem:[%s5343_s5 + $0x8] sm:$0xff]   ;;  %v4174_v32 = vld [vmem:[%s5343_s5 + $0x50] sm:$0xff]  }
  0x44   :  { %1640 = vmatmul.mubr.bf16.vlgmr.msra.gmra.mrb[4].mxu1 %v238_v49  ;;  %3739 = vmatpush3.bf16.msra.mxu0 %v4104_v45  ;;  %v4144_v45 = vld [vmem:[%s5341_s3 + $0x310] sm:$0xff]   ;;  %v4147_v49 = vld [vmem:[%s5341_s3 + $0x3d8] sm:$0xff]   ;;  %v4173_v31 = vld [vmem:[%s5343_s5 + $0x88] sm:$0xff]  }
  0x45   :  { %3761 = vmatpush3.bf16.msra.mxu1 %v4105_v50  ;;  %3740 = vmatprep.subr.bf16.mxu0 %v4106_v51  ;;  %v4148_v50 = vld [vmem:[%s5341_s3 + $0x318] sm:$0xff]  }
  0x46   :  { %3762 = vmatprep.subr.bf16.mxu1 %v4107_v52  ;;  %1679 = vmatprep.mubr.bf16.mxu0 %v241_v35  ;;  %v4149_v51 = vld [vmem:[%s5341_s3 + $0x398] sm:$0xff]   ;;  %v4150_v52 = vld [vmem:[%s5341_s3 + $0x360] sm:$0xff]   ;;  %v4177_v35 = vld [vmem:[%s5343_s5 + $0x90] sm:$0xff]  }
  0x47   :  { %1719 = vmatprep.mubr.bf16.mxu1 %v243_v36  ;;  %v4178_v36 = vld [vmem:[%s5343_s5 + $0x58] sm:$0xff]  }
  0x48   :  { %3741 = vmatpush3.bf16.msra.mxu0 %v4108_v53  ;;  %v4151_v53 = vld [vmem:[%s5341_s3 + $0x3e0] sm:$0xff]  }
  0x49   :  { %3763 = vmatpush3.bf16.msra.mxu1 %v4109_v54  ;;  %3742 = vmatprep.subr.bf16.mxu0 %v4110_v55  ;;  %v4152_v54 = vld [vmem:[%s5341_s3 + $0x320] sm:$0xff]  }
  0x4a   :  { %3764 = vmatprep.subr.bf16.mxu1 %v4111_v56  ;;  %v4153_v55 = vld [vmem:[%s5341_s3 + $0x3a0] sm:$0xff]   ;;  %v4154_v56 = vld [vmem:[%s5341_s3 + $0x368] sm:$0xff]  }
  0x4c   :  { %3743 = vmatpush3.bf16.msra.mxu0 %v4112_v57  ;;  %v4155_v57 = vld [vmem:[%s5341_s3 + $0x3e8] sm:$0xff]  }
  0x4d   :  { %3765 = vmatpush3.bf16.msra.mxu1 %v4113_v58  ;;  %3744 = vmatprep.subr.bf16.mxu0 %v4114_v59  ;;  %v4156_v58 = vld [vmem:[%s5341_s3 + $0x328] sm:$0xff]  }
  0x4e   :  { %3766 = vmatprep.subr.bf16.mxu1 %v4115_v60  ;;  %v4157_v59 = vld [vmem:[%s5341_s3 + $0x3a8] sm:$0xff]   ;;  %v4158_v60 = vld [vmem:[%s5341_s3 + $0x370] sm:$0xff]  }
  0x50   :  { %3745 = vmatpush3.bf16.msra.mxu0 %v4116_v61  ;;  %v4159_v61 = vld [vmem:[%s5341_s3 + $0x3f0] sm:$0xff]  }
  0x51   :  { %3767 = vmatpush3.bf16.msra.mxu1 %v4117_v62  ;;  %3746 = vmatprep.subr.bf16.mxu0 %v4118_v63  ;;  %v4160_v62 = vld [vmem:[%s5341_s3 + $0x330] sm:$0xff]  }
  0x52   :  { %3768 = vmatprep.subr.bf16.mxu1 %v4119_v0  ;;  %v4161_v63 = vld [vmem:[%s5341_s3 + $0x3b0] sm:$0xff]   ;;  %v4162_v0 = vld [vmem:[%s5341_s3 + $0x378] sm:$0xff]  }
  0x54   :  { %3747 = vmatpush3.bf16.msra.mxu0 %v4120_v1  ;;  %v4163_v1 = vld [vmem:[%s5341_s3 + $0x3f8] sm:$0xff]  }
  0x55   :  { %3769 = vmatpush3.bf16.msra.mxu1 %v4121_v2  ;;  %3748 = vmatprep.subr.bf16.mxu0 %v4122_v3  ;;  %v43_v2 = vld [vmem:[%s5338_s0 + $0x18] sm:$0xff] }
  0x56   :  { %3770 = vmatprep.subr.bf16.mxu1 %v4123_v4  ;;  %v47_v3 = vld [vmem:[%s5338_s0 + $0x38] sm:$0xff] }
  0x57   :  { %v51_v4 = vld [vmem:[%s5338_s0 + $0x58] sm:$0xff] }
  0x58   :  { %3749 = vmatpush3.bf16.msra.mxu0 %v4124_v5  ;;  %v55_v5 = vld [vmem:[%s5338_s0 + $0x78] sm:$0xff] }
  0x59   :  { %3771 = vmatpush3.bf16.msra.mxu1 %v4125_v6  ;;  %3750 = vmatprep.subr.bf16.mxu0 %v4126_v7  ;;  %v180_v6 = vcombine.low %v43_v2, %v47_v3  ;;  %v181_v7 = vcombine.high %v43_v2, %v47_v3 }
  0x5a   :  { %3772 = vmatprep.subr.bf16.mxu1 %v4127_v8  ;;  %v4164_v8 = vld [vmem:[%s5341_s3 + $0x338] sm:$0xff]  }
  0x5b   :  { %v197_v13 = vrot.slane %v181_v7, %v4502_v47 }
  0x5c   :  { %3751 = vmatpush3.bf16.msra.mxu0 %v4128_v9  ;;  %v182_v9 = vcombine.low %v51_v4, %v55_v5 }
  0x5d   :  { %3773 = vmatpush3.bf16.msra.mxu1 %v4129_v10  ;;  %3752 = vmatprep.subr.bf16.mxu0 %v4130_v11  ;;  %v183_v10 = vcombine.high %v51_v4, %v55_v5  ;;  %v4165_v11 = vld [vmem:[%s5341_s3 + $0x3b8] sm:$0xff]   ;;  %v4199_v5 = vld [vmem:[%s5343_s5 + $0x1c0] sm:$0xff]  }
  0x5e   :  { %3774 = vmatprep.subr.bf16.mxu1 %v4131_v12  ;;  %v190_v12 = vrot.slane %v180_v6, %v4502_v47  ;;  %v204_v14 = vrot.slane %v182_v9, %v4502_v47  ;;  %v4200_v9 = vld [vmem:[%s5343_s5 + $0x100] sm:$0xff]  }
  0x5f   :  { %v211_v15 = vrot.slane %v183_v10, %v4502_v47 }
  0x60   :  { %3753 = vmatpush3.bf16.msra.mxu0 %v4132_v19  ;;  %v213_v18 = vcombine.high %v190_v12, %v204_v14  ;;  %v212_v20 = vcombine.low %v190_v12, %v204_v14  ;;  %v4201_v12 = vld [vmem:[%s5343_s5 + $0x180] sm:$0xff]  }
  0x61   :  { %3775 = vmatpush3.bf16.msra.mxu1 %v4133_v22  ;;  %3782 = vmatprep.subr.bf16.mxu0 %v4134_v27  ;;  %v215_v19 = vcombine.high %v197_v13, %v211_v15  ;;  %v214_v21 = vcombine.low %v197_v13, %v211_v15  ;;  %v4168_v22 = vld [vmem:[%s5343_s5] sm:$0xff]   ;;  %v4202_v15 = vld [vmem:[%s5343_s5 + $0x148] sm:$0xff]  }
  0x62   :  { %3804 = vmatprep.subr.bf16.mxu1 %v4135_v28  ;;  %v245_v24 = vpack.c.bf16 %v213_v18, %v213_v18  ;;  %v244_v26 = vpack.c.bf16 %v212_v20, %v212_v20  ;;  %v4170_v28 = vld [vmem:[%s5343_s5 + $0x48] sm:$0xff]  }
  0x63   :  { %1680 = vmatmul.mubr.bf16.vlgmr.msra.gmra.mrb[8].mxu0 %v240_v37  ;;  %v247_v25 = vpack.c.bf16 %v215_v19, %v215_v19  ;;  %v246_v27 = vpack.c.bf16 %v214_v21, %v214_v21  ;;  %v4179_v37 = vld [vmem:[%s5343_s5 + $0xd8] sm:$0xff]   ;;  %v4203_v18 = vld [vmem:[%s5343_s5 + $0x1c8] sm:$0xff]   ;;  %v4206_v21 = vld [vmem:[%s5343_s5 + $0x150] sm:$0xff]  }
  0x64   :  { %1720 = vmatmul.mubr.bf16.vlgmr.msra.gmra.mrb[8].mxu1 %v242_v39  ;;  %3783 = vmatpush3.bf16.msra.mxu0 %v4136_v33  ;;  %v4175_v33 = vld [vmem:[%s5343_s5 + $0xd0] sm:$0xff]   ;;  %v4181_v39 = vld [vmem:[%s5343_s5 + $0x98] sm:$0xff]   ;;  %v4204_v19 = vld [vmem:[%s5343_s5 + $0x108] sm:$0xff]  }
  0x65   :  { %3805 = vmatpush3.bf16.msra.mxu1 %v4137_v34  ;;  %3784 = vmatprep.subr.bf16.mxu0 %v4138_v38  ;;  %v4176_v34 = vld [vmem:[%s5343_s5 + $0x10] sm:$0xff]   ;;  %v4180_v38 = vld [vmem:[%s5343_s5 + $0x18] sm:$0xff]   ;;  %v4205_v20 = vld [vmem:[%s5343_s5 + $0x188] sm:$0xff]  }
  0x66   :  { %3806 = vmatprep.subr.bf16.mxu1 %v4139_v40  ;;  %1759 = vmatprep.mubr.bf16.mxu0 %v245_v24  ;;  %v4182_v40 = vld [vmem:[%s5343_s5 + $0x60] sm:$0xff]   ;;  %v4209_v24 = vld [vmem:[%s5343_s5 + $0x190] sm:$0xff]  }
  0x67   :  { %1799 = vmatprep.mubr.bf16.mxu1 %v247_v25  ;;  %v4210_v25 = vld [vmem:[%s5343_s5 + $0x158] sm:$0xff]  }
  0x68   :  { %3785 = vmatpush3.bf16.msra.mxu0 %v4140_v41  ;;  %v4183_v41 = vld [vmem:[%s5343_s5 + $0xe0] sm:$0xff]  }
  0x69   :  { %3807 = vmatpush3.bf16.msra.mxu1 %v4141_v42  ;;  %3786 = vmatprep.subr.bf16.mxu0 %v4142_v43  ;;  %v4184_v42 = vld [vmem:[%s5343_s5 + $0x20] sm:$0xff]  }
  0x6a   :  { %3808 = vmatprep.subr.bf16.mxu1 %v4143_v44  ;;  %v4185_v43 = vld [vmem:[%s5343_s5 + $0xa0] sm:$0xff]   ;;  %v4186_v44 = vld [vmem:[%s5343_s5 + $0x68] sm:$0xff]  }
  0x6c   :  { %3787 = vmatpush3.bf16.msra.mxu0 %v4144_v45  ;;  %v4187_v45 = vld [vmem:[%s5343_s5 + $0xe8] sm:$0xff]  }
  0x6d   :  { %3809 = vmatpush3.bf16.msra.mxu1 %v4145_v46  ;;  %3788 = vmatprep.subr.bf16.mxu0 %v4146_v48  ;;  %v4188_v46 = vld [vmem:[%s5343_s5 + $0x28] sm:$0xff]  }
  0x6e   :  { %3810 = vmatprep.subr.bf16.mxu1 %v4147_v49  ;;  %v4189_v48 = vld [vmem:[%s5343_s5 + $0xa8] sm:$0xff]   ;;  %v4190_v49 = vld [vmem:[%s5343_s5 + $0x70] sm:$0xff]  }
  0x70   :  { %3789 = vmatpush3.bf16.msra.mxu0 %v4148_v50  ;;  %v4191_v50 = vld [vmem:[%s5343_s5 + $0xf0] sm:$0xff]  }
  0x71   :  { %3811 = vmatpush3.bf16.msra.mxu1 %v4149_v51  ;;  %3790 = vmatprep.subr.bf16.mxu0 %v4150_v52  ;;  %v4192_v51 = vld [vmem:[%s5343_s5 + $0x30] sm:$0xff]  }
  0x72   :  { %3812 = vmatprep.subr.bf16.mxu1 %v4151_v53  ;;  %v4193_v52 = vld [vmem:[%s5343_s5 + $0xb0] sm:$0xff]   ;;  %v4194_v53 = vld [vmem:[%s5343_s5 + $0x78] sm:$0xff]  }
  0x74   :  { %3791 = vmatpush3.bf16.msra.mxu0 %v4152_v54  ;;  %v4195_v54 = vld [vmem:[%s5343_s5 + $0xf8] sm:$0xff]  }
  0x75   :  { %3813 = vmatpush3.bf16.msra.mxu1 %v4153_v55  ;;  %3792 = vmatprep.subr.bf16.mxu0 %v4154_v56  ;;  %v248_v55 = vld [vmem:[%s5339_s1] sm:$0xff]  ;;  %v4196_v56 = vld [vmem:[%s5343_s5 + $0x38] sm:$0xff]  }
  0x76   :  { %3814 = vmatprep.subr.bf16.mxu1 %v4155_v57  ;;  %v252_v57 = vld [vmem:[%s5339_s1 + $0x20] sm:$0xff] }
  0x78   :  { %3793 = vmatpush3.bf16.msra.mxu0 %v4156_v58  ;;  %v256_v58 = vld [vmem:[%s5339_s1 + $0x40] sm:$0xff] }
  0x79   :  { %3815 = vmatpush3.bf16.msra.mxu1 %v4157_v59  ;;  %3794 = vmatprep.subr.bf16.mxu0 %v4158_v60  ;;  %v260_v59 = vld [vmem:[%s5339_s1 + $0x60] sm:$0xff]  ;;  %v4197_v60 = vld [vmem:[%s5343_s5 + $0xb8] sm:$0xff]  }
  0x7a   :  { %3816 = vmatprep.subr.bf16.mxu1 %v4159_v61  ;;  %v280_v61 = vcombine.low %v248_v55, %v252_v57 }
  0x7c   :  { %3795 = vmatpush3.bf16.msra.mxu0 %v4160_v62  ;;  %v282_v62 = vcombine.low %v256_v58, %v260_v59  ;;  %v290_v2 = vrot.slane %v280_v61, %v4502_v47 }
  0x7d   :  { %3817 = vmatpush3.bf16.msra.mxu1 %v4161_v63  ;;  %3796 = vmatprep.subr.bf16.mxu0 %v4162_v0  ;;  %v281_v63 = vcombine.high %v248_v55, %v252_v57  ;;  %v283_v0 = vcombine.high %v256_v58, %v260_v59  ;;  %v4231_v59 = vld [vmem:[%s5343_s5 + $0x2c0] sm:$0xff]  }
  0x7e   :  { %3818 = vmatprep.subr.bf16.mxu1 %v4163_v1  ;;  %v4198_v1 = vld [vmem:[%s5343_s5 + $0x140] sm:$0xff]   ;;  %v304_v3 = vrot.slane %v282_v62, %v4502_v47 }
  0x7f   :  { %v297_v4 = vrot.slane %v281_v63, %v4502_v47  ;;  %v311_v6 = vrot.slane %v283_v0, %v4502_v47  ;;  %v4232_v0 = vld [vmem:[%s5343_s5 + $0x200] sm:$0xff]  }
  0x80   :  { %3797 = vmatpush3.bf16.msra.mxu0 %v4164_v8  ;;  %v313_v7 = vcombine.high %v290_v2, %v304_v3  ;;  %v312_v8 = vcombine.low %v290_v2, %v304_v3 }
  0x81   :  { %3819 = vmatpush3.bf16.msra.mxu1 %v4165_v11  ;;  %3826 = vmatprep.subr.bf16.mxu0 %v4166_v16  ;;  %v315_v10 = vcombine.high %v297_v4, %v311_v6  ;;  %v314_v11 = vcombine.low %v297_v4, %v311_v6  ;;  %v4234_v6 = vld [vmem:[%s5343_s5 + $0x248] sm:$0xff]  }
  0x82   :  { %3848 = vmatprep.subr.bf16.mxu1 %v4167_v17  ;;  %v441_v13 = vpack.c.bf16 %v313_v7, %v313_v7  ;;  %v440_v14 = vpack.c.bf16 %v312_v8, %v312_v8  ;;  %v4235_v7 = vld [vmem:[%s5343_s5 + $0x2c8] sm:$0xff]  }
  0x83   :  { %1760 = vmatmul.mubr.bf16.vlgmr.msra.gmra.mrb[12].mxu0 %v244_v26  ;;  %v443_v16 = vpack.c.bf16 %v315_v10, %v315_v10  ;;  %v442_v17 = vpack.c.bf16 %v314_v11, %v314_v11  ;;  %v4211_v26 = vld [vmem:[%s5343_s5 + $0x1d8] sm:$0xff]   ;;  %v4236_v8 = vld [vmem:[%s5343_s5 + $0x208] sm:$0xff]   ;;  %v4238_v10 = vld [vmem:[%s5343_s5 + $0x250] sm:$0xff]  }
  0x84   :  { %1800 = vmatmul.mubr.bf16.vlgmr.msra.gmra.mrb[12].mxu1 %v246_v27  ;;  %3827 = vmatpush3.bf16.msra.mxu0 %v4168_v22  ;;  %v4207_v22 = vld [vmem:[%s5343_s5 + $0x1d0] sm:$0xff]   ;;  %v4212_v27 = vld [vmem:[%s5343_s5 + $0x118] sm:$0xff]  }
  0x85   :  { %3849 = vmatpush3.bf16.msra.mxu1 %v4169_v23  ;;  %3828 = vmatprep.subr.bf16.mxu0 %v4170_v28  ;;  %v4208_v23 = vld [vmem:[%s5343_s5 + $0x110] sm:$0xff]   ;;  %v4213_v28 = vld [vmem:[%s5343_s5 + $0x198] sm:$0xff]  }
  0x86   :  { %3850 = vmatprep.subr.bf16.mxu1 %v4171_v29  ;;  %2872 = vmatprep.mubr.bf16.mxu0 %v441_v13  ;;  %v4214_v29 = vld [vmem:[%s5343_s5 + $0x160] sm:$0xff]   ;;  %v4239_v11 = vld [vmem:[%s5343_s5 + $0x2d0] sm:$0xff]  }
  0x87   :  { %2912 = vmatprep.mubr.bf16.mxu1 %v443_v16  ;;  %v4241_v13 = vld [vmem:[%s5343_s5 + $0x290] sm:$0xff]   ;;  %v4244_v16 = vld [vmem:[%s5343_s5 + $0x218] sm:$0xff]  }
  0x88   :  { %3829 = vmatpush3.bf16.msra.mxu0 %v4172_v30  ;;  %v4215_v30 = vld [vmem:[%s5343_s5 + $0x1e0] sm:$0xff]  }
  0x89   :  { %3851 = vmatpush3.bf16.msra.mxu1 %v4173_v31  ;;  %3830 = vmatprep.subr.bf16.mxu0 %v4174_v32  ;;  %v4216_v31 = vld [vmem:[%s5343_s5 + $0x120] sm:$0xff]  }
  0x8a   :  { %3852 = vmatprep.subr.bf16.mxu1 %v4175_v33  ;;  %v4217_v32 = vld [vmem:[%s5343_s5 + $0x1a0] sm:$0xff]   ;;  %v4218_v33 = vld [vmem:[%s5343_s5 + $0x168] sm:$0xff]  }
  0x8c   :  { %3831 = vmatpush3.bf16.msra.mxu0 %v4176_v34  ;;  %v4219_v34 = vld [vmem:[%s5343_s5 + $0x1e8] sm:$0xff]  }
  0x8d   :  { %3853 = vmatpush3.bf16.msra.mxu1 %v4177_v35  ;;  %3832 = vmatprep.subr.bf16.mxu0 %v4178_v36  ;;  %v4220_v35 = vld [vmem:[%s5343_s5 + $0x128] sm:$0xff]  }
  0x8e   :  { %3854 = vmatprep.subr.bf16.mxu1 %v4179_v37  ;;  %v4221_v36 = vld [vmem:[%s5343_s5 + $0x1a8] sm:$0xff]   ;;  %v4222_v37 = vld [vmem:[%s5343_s5 + $0x170] sm:$0xff]  }
  0x90   :  { %3833 = vmatpush3.bf16.msra.mxu0 %v4180_v38  ;;  %v4223_v38 = vld [vmem:[%s5343_s5 + $0x1f0] sm:$0xff]  }
  0x91   :  { %3855 = vmatpush3.bf16.msra.mxu1 %v4181_v39  ;;  %3834 = vmatprep.subr.bf16.mxu0 %v4182_v40  ;;  %v4224_v39 = vld [vmem:[%s5343_s5 + $0x130] sm:$0xff]  }
  0x92   :  { %3856 = vmatprep.subr.bf16.mxu1 %v4183_v41  ;;  %v4225_v40 = vld [vmem:[%s5343_s5 + $0x1b0] sm:$0xff]   ;;  %v4226_v41 = vld [vmem:[%s5343_s5 + $0x178] sm:$0xff]  }
  0x94   :  { %3835 = vmatpush3.bf16.msra.mxu0 %v4184_v42  ;;  %v4227_v42 = vld [vmem:[%s5343_s5 + $0x1f8] sm:$0xff]  }
  0x95   :  { %3857 = vmatpush3.bf16.msra.mxu1 %v4185_v43  ;;  %3836 = vmatprep.subr.bf16.mxu0 %v4186_v44  ;;  %v4228_v43 = vld [vmem:[%s5343_s5 + $0x138] sm:$0xff]   ;;  %v249_v44 = vld [vmem:[%s5339_s1 + $0x8] sm:$0xff] }
  0x96   :  { %3858 = vmatprep.subr.bf16.mxu1 %v4187_v45  ;;  %v253_v45 = vld [vmem:[%s5339_s1 + $0x28] sm:$0xff] }
  0x98   :  { %3837 = vmatpush3.bf16.msra.mxu0 %v4188_v46  ;;  %v257_v46 = vld [vmem:[%s5339_s1 + $0x48] sm:$0xff] }
  0x99   :  { %3859 = vmatpush3.bf16.msra.mxu1 %v4189_v48  ;;  %3838 = vmatprep.subr.bf16.mxu0 %v4190_v49  ;;  %v261_v48 = vld [vmem:[%s5339_s1 + $0x68] sm:$0xff]  ;;  %v316_v49 = vcombine.low %v249_v44, %v253_v45 }
  0x9a   :  { %3860 = vmatprep.subr.bf16.mxu1 %v4191_v50  ;;  %v317_v50 = vcombine.high %v249_v44, %v253_v45 }
  0x9c   :  { %3839 = vmatpush3.bf16.msra.mxu0 %v4192_v51  ;;  %v4229_v51 = vld [vmem:[%s5343_s5 + $0x1b8] sm:$0xff]   ;;  %v333_v55 = vrot.slane %v317_v50, %v4502_v47 }
  0x9d   :  { %3861 = vmatpush3.bf16.msra.mxu1 %v4193_v52  ;;  %3840 = vmatprep.subr.bf16.mxu0 %v4194_v53  ;;  %v318_v52 = vcombine.low %v257_v46, %v261_v48  ;;  %v319_v53 = vcombine.high %v257_v46, %v261_v48  ;;  %v4262_v46 = vld [vmem:[%s5343_s5 + $0x340] sm:$0xff]  }
  0x9e   :  { %3862 = vmatprep.subr.bf16.mxu1 %v4195_v54  ;;  %v326_v54 = vrot.slane %v316_v49, %v4502_v47  ;;  %v4263_v48 = vld [vmem:[%s5343_s5 + $0x3c0] sm:$0xff]  }
  0x9f   :  { %v340_v57 = vrot.slane %v318_v52, %v4502_v47  ;;  %v347_v58 = vrot.slane %v319_v53, %v4502_v47  ;;  %v4264_v53 = vld [vmem:[%s5343_s5 + $0x300] sm:$0xff]  }
  0xa0   :  { %3841 = vmatpush3.bf16.msra.mxu0 %v4196_v56  ;;  %v4230_v56 = vld [vmem:[%s5343_s5 + $0x240] sm:$0xff]  }
  0xa1   :  { %3863 = vmatpush3.bf16.msra.mxu1 %v4197_v60  ;;  %3870 = vmatprep.subr.bf16.mxu0 %v4198_v1  ;;  %v349_v60 = vcombine.high %v326_v54, %v340_v57  ;;  %v351_v61 = vcombine.high %v333_v55, %v347_v58  ;;  %v348_v62 = vcombine.low %v326_v54, %v340_v57  ;;  %v4233_v1 = vld [vmem:[%s5343_s5 + $0x280] sm:$0xff]  }
  0xa2   :  { %3892 = vmatprep.subr.bf16.mxu1 %v4199_v5  ;;  %v350_v63 = vcombine.low %v333_v55, %v347_v58  ;;  %v4265_v54 = vld [vmem:[%s5343_s5 + $0x380] sm:$0xff]  }
  0xa3   :  { %2873 = vmatmul.mubr.bf16.vlgmr.msra.gmra.mrb[16].mxu0 %v440_v14  ;;  %v445_v2 = vpack.c.bf16 %v349_v60, %v349_v60  ;;  %v447_v3 = vpack.c.bf16 %v351_v61, %v351_v61  ;;  %v444_v4 = vpack.c.bf16 %v348_v62, %v348_v62  ;;  %v4242_v14 = vld [vmem:[%s5343_s5 + $0x258] sm:$0xff]   ;;  %v4267_v60 = vld [vmem:[%s5343_s5 + $0x3c8] sm:$0xff]  }
  0xa4   :  { %2913 = vmatmul.mubr.bf16.vlgmr.msra.gmra.mrb[16].mxu1 %v442_v17  ;;  %3871 = vmatpush3.bf16.msra.mxu0 %v4200_v9  ;;  %v446_v5 = vpack.c.bf16 %v350_v63, %v350_v63  ;;  %v4237_v9 = vld [vmem:[%s5343_s5 + $0x288] sm:$0xff]   ;;  %v4245_v17 = vld [vmem:[%s5343_s5 + $0x298] sm:$0xff]   ;;  %v4270_v63 = vld [vmem:[%s5343_s5 + $0x350] sm:$0xff]  }
  0xa5   :  { %3893 = vmatpush3.bf16.msra.mxu1 %v4201_v12  ;;  %3872 = vmatprep.subr.bf16.mxu0 %v4202_v15  ;;  %v4240_v12 = vld [vmem:[%s5343_s5 + $0x210] sm:$0xff]   ;;  %v4243_v15 = vld [vmem:[%s5343_s5 + $0x2d8] sm:$0xff]   ;;  %v4268_v61 = vld [vmem:[%s5343_s5 + $0x308] sm:$0xff]  }
  0xa6   :  { %3894 = vmatprep.subr.bf16.mxu1 %v4203_v18  ;;  %2952 = vmatprep.mubr.bf16.mxu0 %v445_v2  ;;  %v4246_v18 = vld [vmem:[%s5343_s5 + $0x260] sm:$0xff]   ;;  %v4269_v62 = vld [vmem:[%s5343_s5 + $0x388] sm:$0xff]   ;;  %v4273_v2 = vld [vmem:[%s5343_s5 + $0x390] sm:$0xff]  }
  0xa7   :  { %2992 = vmatprep.mubr.bf16.mxu1 %v447_v3  ;;  %v4274_v3 = vld [vmem:[%s5343_s5 + $0x358] sm:$0xff]  }
  0xa8   :  { %3873 = vmatpush3.bf16.msra.mxu0 %v4204_v19  ;;  %v4247_v19 = vld [vmem:[%s5343_s5 + $0x2e0] sm:$0xff]  }
  0xa9   :  { %3895 = vmatpush3.bf16.msra.mxu1 %v4205_v20  ;;  %3874 = vmatprep.subr.bf16.mxu0 %v4206_v21  ;;  %v4248_v20 = vld [vmem:[%s5343_s5 + $0x220] sm:$0xff]  }
  0xaa   :  { %3896 = vmatprep.subr.bf16.mxu1 %v4207_v22  ;;  %v4249_v21 = vld [vmem:[%s5343_s5 + $0x2a0] sm:$0xff]   ;;  %v4250_v22 = vld [vmem:[%s5343_s5 + $0x268] sm:$0xff]  }
  0xac   :  { %3875 = vmatpush3.bf16.msra.mxu0 %v4208_v23  ;;  %v4251_v23 = vld [vmem:[%s5343_s5 + $0x2e8] sm:$0xff]  }
  0xad   :  { %3897 = vmatpush3.bf16.msra.mxu1 %v4209_v24  ;;  %3876 = vmatprep.subr.bf16.mxu0 %v4210_v25  ;;  %v4252_v24 = vld [vmem:[%s5343_s5 + $0x228] sm:$0xff]  }
  0xae   :  { %3898 = vmatprep.subr.bf16.mxu1 %v4211_v26  ;;  %v4253_v25 = vld [vmem:[%s5343_s5 + $0x2a8] sm:$0xff]   ;;  %v4254_v26 = vld [vmem:[%s5343_s5 + $0x270] sm:$0xff]  }
  0xb0   :  { %3877 = vmatpush3.bf16.msra.mxu0 %v4212_v27  ;;  %v4255_v27 = vld [vmem:[%s5343_s5 + $0x2f0] sm:$0xff]  }
  0xb1   :  { %3899 = vmatpush3.bf16.msra.mxu1 %v4213_v28  ;;  %3878 = vmatprep.subr.bf16.mxu0 %v4214_v29  ;;  %v4256_v28 = vld [vmem:[%s5343_s5 + $0x230] sm:$0xff]  }
  0xb2   :  { %3900 = vmatprep.subr.bf16.mxu1 %v4215_v30  ;;  %v4257_v29 = vld [vmem:[%s5343_s5 + $0x2b0] sm:$0xff]   ;;  %v4258_v30 = vld [vmem:[%s5343_s5 + $0x278] sm:$0xff]  }
  0xb4   :  { %3879 = vmatpush3.bf16.msra.mxu0 %v4216_v31  ;;  %v4259_v31 = vld [vmem:[%s5343_s5 + $0x2f8] sm:$0xff]  }
  0xb5   :  { %3901 = vmatpush3.bf16.msra.mxu1 %v4217_v32  ;;  %3880 = vmatprep.subr.bf16.mxu0 %v4218_v33  ;;  %v250_v32 = vld [vmem:[%s5339_s1 + $0x10] sm:$0xff] }
  0xb6   :  { %3902 = vmatprep.subr.bf16.mxu1 %v4219_v34  ;;  %v254_v33 = vld [vmem:[%s5339_s1 + $0x30] sm:$0xff] }
  0xb7   :  { %v258_v34 = vld [vmem:[%s5339_s1 + $0x50] sm:$0xff] }
  0xb8   :  { %3881 = vmatpush3.bf16.msra.mxu0 %v4220_v35  ;;  %v262_v35 = vld [vmem:[%s5339_s1 + $0x70] sm:$0xff] }
  0xb9   :  { %3903 = vmatpush3.bf16.msra.mxu1 %v4221_v36  ;;  %3882 = vmatprep.subr.bf16.mxu0 %v4222_v37  ;;  %v352_v36 = vcombine.low %v250_v32, %v254_v33  ;;  %v353_v37 = vcombine.high %v250_v32, %v254_v33  ;;  %v4290_v32 = vld [vmem:[%s5343_s5 + $0x378] sm:$0xff]  }
  0xba   :  { %3904 = vmatprep.subr.bf16.mxu1 %v4223_v38  ;;  %v4260_v38 = vld [vmem:[%s5343_s5 + $0x238] sm:$0xff]  }
  0xbb   :  { %v4291_v33 = vld [vmem:[%s5343_s5 + $0x3f8] sm:$0xff]  }
  0xbc   :  { %3883 = vmatpush3.bf16.msra.mxu0 %v4224_v39  ;;  %v354_v39 = vcombine.low %v258_v34, %v262_v35 }
  0xbd   :  { %3905 = vmatpush3.bf16.msra.mxu1 %v4225_v40  ;;  %3884 = vmatprep.subr.bf16.mxu0 %v4226_v41  ;;  %v355_v40 = vcombine.high %v258_v34, %v262_v35  ;;  %v4261_v41 = vld [vmem:[%s5343_s5 + $0x2b8] sm:$0xff]  }
  0xbe   :  { %3906 = vmatprep.subr.bf16.mxu1 %v4227_v42  ;;  %v362_v42 = vrot.slane %v352_v36, %v4502_v47  ;;  %v376_v44 = vrot.slane %v354_v39, %v4502_v47  ;;  %v4292_v34 = vld [vmem:[%s5343_s5 + $0x338] sm:$0xff]  }
  0xbf   :  { %v383_v45 = vrot.slane %v355_v40, %v4502_v47  ;;  %v251_v35 = vld [vmem:[%s5339_s1 + $0x18] sm:$0xff] }
  0xc0   :  { %3885 = vmatpush3.bf16.msra.mxu0 %v4228_v43  ;;  %v369_v43 = vrot.slane %v353_v37, %v4502_v47  ;;  %v385_v49 = vcombine.high %v362_v42, %v376_v44  ;;  %v255_v36 = vld [vmem:[%s5339_s1 + $0x38] sm:$0xff] }
  0xc1   :  { %3907 = vmatpush3.bf16.msra.mxu1 %v4229_v51  ;;  %3914 = vmatprep.subr.bf16.mxu0 %v4230_v56  ;;  %v384_v51 = vcombine.low %v362_v42, %v376_v44  ;;  %v259_v37 = vld [vmem:[%s5339_s1 + $0x58] sm:$0xff]  ;;  %v388_v40 = vcombine.low %v251_v35, %v255_v36  ;;  %v389_v42 = vcombine.high %v251_v35, %v255_v36 }
  0xc2   :  { %3936 = vmatprep.subr.bf16.mxu1 %v4231_v59  ;;  %v387_v50 = vcombine.high %v369_v43, %v383_v45  ;;  %v386_v52 = vcombine.low %v369_v43, %v383_v45  ;;  %v449_v55 = vpack.c.bf16 %v385_v49, %v385_v49  ;;  %v4266_v59 = vld [vmem:[%s5343_s5 + $0x348] sm:$0xff]   ;;  %v4293_v39 = vld [vmem:[%s5343_s5 + $0x3b8] sm:$0xff]  }
  0xc3   :  { %2953 = vmatmul.mubr.bf16.vlgmr.msra.gmra.mrb[20].mxu0 %v444_v4  ;;  %v448_v57 = vpack.c.bf16 %v384_v51, %v384_v51  ;;  %v4275_v4 = vld [vmem:[%s5343_s5 + $0x3d8] sm:$0xff]   ;;  %v398_v44 = vrot.slane %v388_v40, %v4502_v47 }
  0xc4   :  { %2993 = vmatmul.mubr.bf16.vlgmr.msra.gmra.mrb[20].mxu1 %v446_v5  ;;  %3915 = vmatpush3.bf16.msra.mxu0 %v4232_v0  ;;  %v451_v56 = vpack.c.bf16 %v387_v50, %v387_v50  ;;  %v450_v58 = vpack.c.bf16 %v386_v52, %v386_v52  ;;  %v4271_v0 = vld [vmem:[%s5343_s5 + $0x3d0] sm:$0xff]   ;;  %v4276_v5 = vld [vmem:[%s5343_s5 + $0x318] sm:$0xff]  }
  0xc5   :  { %3937 = vmatpush3.bf16.msra.mxu1 %v4233_v1  ;;  %3916 = vmatprep.subr.bf16.mxu0 %v4234_v6  ;;  %v4272_v1 = vld [vmem:[%s5343_s5 + $0x310] sm:$0xff]   ;;  %v4277_v6 = vld [vmem:[%s5343_s5 + $0x398] sm:$0xff]  }
  0xc6   :  { %3938 = vmatprep.subr.bf16.mxu1 %v4235_v7  ;;  %3032 = vmatprep.mubr.bf16.mxu0 %v449_v55  ;;  %v4278_v7 = vld [vmem:[%s5343_s5 + $0x360] sm:$0xff]  }
  0xc7   :  { %3072 = vmatprep.mubr.bf16.mxu1 %v451_v56  ;;  %v4294_v56 = vld [vmem:[%s5345_s7] sm:$0xff]  }
  0xc8   :  { %3917 = vmatpush3.bf16.msra.mxu0 %v4236_v8  ;;  %v4279_v8 = vld [vmem:[%s5343_s5 + $0x3e0] sm:$0xff]  }
  0xc9   :  { %3939 = vmatpush3.bf16.msra.mxu1 %v4237_v9  ;;  %3918 = vmatprep.subr.bf16.mxu0 %v4238_v10  ;;  %v4280_v9 = vld [vmem:[%s5343_s5 + $0x320] sm:$0xff]  }
  0xca   :  { %3940 = vmatprep.subr.bf16.mxu1 %v4239_v11  ;;  %v4281_v10 = vld [vmem:[%s5343_s5 + $0x3a0] sm:$0xff]   ;;  %v4282_v11 = vld [vmem:[%s5343_s5 + $0x368] sm:$0xff]  }
  0xcc   :  { %3919 = vmatpush3.bf16.msra.mxu0 %v4240_v12  ;;  %v3384_v12 = vld [vmem:[%s5342_s4] ss:$0 sm:$0xff] }
  0xcd   :  { %3941 = vmatpush3.bf16.msra.mxu1 %v4241_v13  ;;  %3920 = vmatprep.subr.bf16.mxu0 %v4242_v14  ;;  %v4283_v13 = vld [vmem:[%s5343_s5 + $0x3e8] sm:$0xff]  }
  0xce   :  { %3942 = vmatprep.subr.bf16.mxu1 %v4243_v15 }
  0xd0   :  { %3921 = vmatpush3.bf16.msra.mxu0 %v4244_v16 }
  0xd1   :  { %3943 = vmatpush3.bf16.msra.mxu1 %v4245_v17  ;;  %3922 = vmatprep.subr.bf16.mxu0 %v4246_v18  ;;  %v4284_v18 = vld [vmem:[%s5343_s5 + $0x328] sm:$0xff]  }
  0xd2   :  { %3944 = vmatprep.subr.bf16.mxu1 %v4247_v19  ;;  %v4285_v19 = vld [vmem:[%s5343_s5 + $0x3a8] sm:$0xff]  }
  0xd4   :  { %3923 = vmatpush3.bf16.msra.mxu0 %v4248_v20 }
  0xd5   :  { %3945 = vmatpush3.bf16.msra.mxu1 %v4249_v21  ;;  %3924 = vmatprep.subr.bf16.mxu0 %v4250_v22 }
  0xd6   :  { %3946 = vmatprep.subr.bf16.mxu1 %v4251_v23 }
  0xd8   :  { %3925 = vmatpush3.bf16.msra.mxu0 %v4252_v24 }
  0xd9   :  { %3947 = vmatpush3.bf16.msra.mxu1 %v4253_v25  ;;  %3926 = vmatprep.subr.bf16.mxu0 %v4254_v26  ;;  %v4286_v26 = vld [vmem:[%s5343_s5 + $0x370] sm:$0xff]  }
  0xda   :  { %3948 = vmatprep.subr.bf16.mxu1 %v4255_v27  ;;  %v4287_v27 = vld [vmem:[%s5343_s5 + $0x3f0] sm:$0xff]  }
  0xdc   :  { %3927 = vmatpush3.bf16.msra.mxu0 %v4256_v28 }
  0xdd   :  { %3949 = vmatpush3.bf16.msra.mxu1 %v4257_v29  ;;  %3928 = vmatprep.subr.bf16.mxu0 %v4258_v30  ;;  %v4288_v29 = vld [vmem:[%s5343_s5 + $0x330] sm:$0xff]  }
  0xde   :  { %3950 = vmatprep.subr.bf16.mxu1 %v4259_v31  ;;  %v4289_v31 = vld [vmem:[%s5343_s5 + $0x3b0] sm:$0xff]  }
  0xe0   :  { %3929 = vmatpush3.bf16.msra.mxu0 %v4260_v38  ;;  %v263_v38 = vld [vmem:[%s5339_s1 + $0x78] sm:$0xff] }
  0xe1   :  { %3951 = vmatpush3.bf16.msra.mxu1 %v4261_v41  ;;  %3958 = vmatprep.subr.bf16.mxu0 %v4262_v46  ;;  %v390_v41 = vcombine.low %v259_v37, %v263_v38  ;;  %v391_v43 = vcombine.high %v259_v37, %v263_v38  ;;  %v405_v46 = vrot.slane %v389_v42, %v4502_v47  ;;  %v3513_v37 = vld [vmem:[%s5344_s6] ss:$0 sm:$0xff] }
  0xe2   :  { %3980 = vmatprep.subr.bf16.mxu1 %v4263_v48 }
  0xe3   :  { %3033 = vmatmul.mubr.bf16.vlgmr.msra.gmra.mrb[24].mxu0 %v448_v57  ;;  %v412_v45 = vrot.slane %v390_v41, %v4502_v47  ;;  %v419_v48 = vrot.slane %v391_v43, %v4502_v47  ;;  %v4295_v47 = vld [vmem:[%s5345_s7 + $0x8] sm:$0xff]  }
  0xe4   :  { %3073 = vmatmul.mubr.bf16.vlgmr.msra.gmra.mrb[24].mxu1 %v450_v58  ;;  %3959 = vmatpush3.bf16.msra.mxu0 %v4264_v53  ;;  %v4323_v53 = vmov 0.0  }
  0xe5   :  { %3981 = vmatpush3.bf16.msra.mxu1 %v4265_v54  ;;  %3960 = vmatprep.subr.bf16.mxu0 %v4266_v59  ;;  %v421_v49 = vcombine.high %v398_v44, %v412_v45  ;;  %v420_v50 = vcombine.low %v398_v44, %v412_v45  ;;  %v423_v51 = vcombine.high %v405_v46, %v419_v48 }
  0xe6   :  { %3982 = vmatprep.subr.bf16.mxu1 %v4267_v60  ;;  %v422_v52 = vcombine.low %v405_v46, %v419_v48 }
  0xe7   :  { %v453_v54 = vpack.c.bf16 %v421_v49, %v421_v49  ;;  %v452_v55 = vpack.c.bf16 %v420_v50, %v420_v50  ;;  %v455_v57 = vpack.c.bf16 %v423_v51, %v423_v51 }
  0xe8   :  { %3961 = vmatpush3.bf16.msra.mxu0 %v4268_v61  ;;  %v454_v58 = vpack.c.bf16 %v422_v52, %v422_v52 }
  0xe9   :  { %3983 = vmatpush3.bf16.msra.mxu1 %v4269_v62  ;;  %3962 = vmatprep.subr.bf16.mxu0 %v4270_v63 }
  0xea   :  { %3984 = vmatprep.subr.bf16.mxu1 %v4271_v0  ;;  %3112 = vmatprep.mubr.bf16.mxu0 %v453_v54 }
  0xeb   :  { %3152 = vmatprep.mubr.bf16.mxu1 %v455_v57 }
  0xec   :  { %3963 = vmatpush3.bf16.msra.mxu0 %v4272_v1 }
  0xed   :  { %3985 = vmatpush3.bf16.msra.mxu1 %v4273_v2  ;;  %3964 = vmatprep.subr.bf16.mxu0 %v4274_v3 }
  0xee   :  { %3986 = vmatprep.subr.bf16.mxu1 %v4275_v4 }
  0xf0   :  { %3965 = vmatpush3.bf16.msra.mxu0 %v4276_v5 }
  0xf1   :  { %3987 = vmatpush3.bf16.msra.mxu1 %v4277_v6  ;;  %3966 = vmatprep.subr.bf16.mxu0 %v4278_v7 }
  0xf2   :  { %3988 = vmatprep.subr.bf16.mxu1 %v4279_v8 }
  0xf4   :  { %3967 = vmatpush3.bf16.msra.mxu0 %v4280_v9 }
  0xf5   :  { %3989 = vmatpush3.bf16.msra.mxu1 %v4281_v10  ;;  %3968 = vmatprep.subr.bf16.mxu0 %v4282_v11 }
  0xf6   :  { %v3666_v14 = vpop.f32.mrb[0].mxu0  ;;  %3990 = vmatprep.subr.bf16.mxu1 %v4283_v13 }
  0xf7   :  { %v3688_v15 = vpop.f32.mrb[0].mxu1  ;;  %v3667_v16 = vpop.f32.mrb[1].mxu0 }
  0xf8   :  { %v3689_v17 = vpop.f32.mrb[1].mxu1  ;;  %v3668_v20 = vadd.f32 %v3667_v16, %v3666_v14  ;;  %v3669_v22 = vpop.f32.mrb[2].mxu0  ;;  %3969 = vmatpush3.bf16.msra.mxu0 %v4284_v18 }
  0xf9   :  { %v3690_v21 = vadd.f32 %v3689_v17, %v3688_v15  ;;  %v3691_v23 = vpop.f32.mrb[2].mxu1  ;;  %v3670_v24 = vpop.f32.mrb[3].mxu0  ;;  %3991 = vmatpush3.bf16.msra.mxu1 %v4285_v19  ;;  %3970 = vmatprep.subr.bf16.mxu0 %v4286_v26 }
  0xfa   :  { %v3692_v25 = vpop.f32.mrb[3].mxu1  ;;  %v1522_v28 = vadd.f32 %v3668_v20, %v3384_v12  ;;  %3992 = vmatprep.subr.bf16.mxu1 %v4287_v27 }
  0xfc   :  { %v1562_v30 = vadd.f32 %v3690_v21, %v1522_v28  ;;  %3971 = vmatpush3.bf16.msra.mxu0 %v4288_v29 }
  0xfd   :  { %3993 = vmatpush3.bf16.msra.mxu1 %v4289_v31  ;;  %3972 = vmatprep.subr.bf16.mxu0 %v4290_v32 }
  0xfe   :  { %3994 = vmatprep.subr.bf16.mxu1 %v4291_v33  ;;  %v4296_v33 = vld [vmem:[%s5346_s8] sm:$0xff]  }
 0x100   :  { %3973 = vmatpush3.bf16.msra.mxu0 %v4292_v34  ;;  %v4297_v34 = vld [vmem:[%s5346_s8 + $0x8] sm:$0xff]  }
 0x101   :  { %3995 = vmatpush3.bf16.msra.mxu1 %v4293_v39  ;;  %4018 = vmatprep.subr.bf16.mxu0 %v4323_v53 }
 0x102   :  { %4010 = vmatprep.subr.bf16.mxu1 %v4323_v53 }
 0x103   :  { %3113 = vmatmul.mubr.bf16.vlgmr.msra.gmra.mrb[28].mxu0 %v452_v55 }
 0x104   :  { %3153 = vmatmul.mubr.bf16.vlgmr.msra.gmra.mrb[28].mxu1 %v454_v58  ;;  %4019 = vmatpush3.bf16.msra.mxu0 %v4294_v56 }
 0x105   :  { %4020 = vmatprep.subr.bf16.mxu0 %v4323_v53  ;;  %4022 = vmatprep.mubr.msk.bf16.mxu0 %vm4324_vm0, %v4323_v53 }
 0x106   :  { %4014 = vmatprep.mubr.msk.bf16.mxu1 %vm4324_vm0, %v4323_v53  ;;  %4011 = vmatpush3.bf16.msra.mxu1 %v4296_v33 }
 0x107   :  { %4012 = vmatprep.subr.bf16.mxu1 %v4323_v53 }
 0x108   :  { %4021 = vmatpush3.bf16.msra.mxu0 %v4295_v47 }
 0x10a   :  { %4013 = vmatpush3.bf16.msra.mxu1 %v4297_v34 }
 0x10b   :  { %4026 = vmatprep.subr.mxu1 %v4323_v53 }
 0x116   :  { %v3710_v59 = vpop.f32.mrb[4].mxu0 }
 0x117   :  { %v3732_v60 = vpop.f32.mrb[4].mxu1  ;;  %v3711_v61 = vpop.f32.mrb[5].mxu0 }
 0x118   :  { %v3733_v62 = vpop.f32.mrb[5].mxu1  ;;  %v3712_v63 = vadd.f32 %v3711_v61, %v3710_v59  ;;  %v3713_v1 = vpop.f32.mrb[6].mxu0 }
 0x119   :  { %v3734_v0 = vadd.f32 %v3733_v62, %v3732_v60  ;;  %v3735_v2 = vpop.f32.mrb[6].mxu1  ;;  %v3714_v3 = vpop.f32.mrb[7].mxu0 }
 0x11a   :  { %v3736_v4 = vpop.f32.mrb[7].mxu1  ;;  %v1602_v5 = vadd.f32 %v3712_v63, %v1562_v30 }
 0x11c   :  { %v1642_v6 = vadd.f32 %v3734_v0, %v1602_v5 }
 0x136   :  { %v3754_v7 = vpop.f32.mrb[8].mxu0 }
 0x137   :  { %v3776_v8 = vpop.f32.mrb[8].mxu1  ;;  %v3755_v9 = vpop.f32.mrb[9].mxu0 }
 0x138   :  { %v3777_v10 = vpop.f32.mrb[9].mxu1  ;;  %v3756_v11 = vadd.f32 %v3755_v9, %v3754_v7  ;;  %v3757_v13 = vpop.f32.mrb[10].mxu0 }
 0x139   :  { %v3778_v12 = vadd.f32 %v3777_v10, %v3776_v8  ;;  %v3779_v14 = vpop.f32.mrb[10].mxu1  ;;  %v3758_v15 = vpop.f32.mrb[11].mxu0 }
 0x13a   :  { %v3780_v16 = vpop.f32.mrb[11].mxu1  ;;  %v1682_v17 = vadd.f32 %v3756_v11, %v1642_v6 }
 0x13c   :  { %v1722_v18 = vadd.f32 %v3778_v12, %v1682_v17 }
 0x156   :  { %v3798_v19 = vpop.f32.mrb[12].mxu0 }
 0x157   :  { %v3820_v20 = vpop.f32.mrb[12].mxu1  ;;  %v3799_v21 = vpop.f32.mrb[13].mxu0 }
 0x158   :  { %v3821_v22 = vpop.f32.mrb[13].mxu1  ;;  %v3800_v23 = vadd.f32 %v3799_v21, %v3798_v19  ;;  %v3801_v25 = vpop.f32.mrb[14].mxu0 }
 0x159   :  { %v3822_v24 = vadd.f32 %v3821_v22, %v3820_v20  ;;  %v3823_v26 = vpop.f32.mrb[14].mxu1  ;;  %v3802_v27 = vpop.f32.mrb[15].mxu0 }
 0x15a   :  { %v3824_v28 = vpop.f32.mrb[15].mxu1  ;;  %v1762_v29 = vadd.f32 %v3800_v23, %v1722_v18  ;;  %v3282_v23 = vld [vmem:[%s5347_s9] sm:$0xff] }
 0x15c   :  { %v1802_v30 = vadd.f32 %v3822_v24, %v1762_v29  ;;  %v3281_v24 = vld [vmem:[%s5340_s2] sm:$0xff] }
 0x15e   :  { %v1807_v31 = vmax.f32 %v1802_v30, 0.0 }
 0x160   :  { %v1808_v32 = vpack.c.bf16 %v1807_v31, %v1807_v31 }
 0x162   :  { %4023 = vmatmul.mubr.msk.bf16.vlgmr.msra.gmra.mrb[32].mxu0 %vm3182_vm1, %v1808_v32 }
 0x176   :  { %v3842_v35 = vpop.f32.mrb[16].mxu0 }
 0x177   :  { %v3864_v36 = vpop.f32.mrb[16].mxu1  ;;  %v3843_v38 = vpop.f32.mrb[17].mxu0 }
 0x178   :  { %v3844_v39 = vadd.f32 %v3843_v38, %v3842_v35  ;;  %v3865_v40 = vpop.f32.mrb[17].mxu1  ;;  %v3845_v41 = vpop.f32.mrb[18].mxu0 }
 0x179   :  { %v3866_v42 = vadd.f32 %v3865_v40, %v3864_v36  ;;  %v3867_v43 = vpop.f32.mrb[18].mxu1  ;;  %v3846_v44 = vpop.f32.mrb[19].mxu0 }
 0x17a   :  { %v2875_v45 = vadd.f32 %v3844_v39, %v3513_v37  ;;  %v3868_v46 = vpop.f32.mrb[19].mxu1 }
 0x17c   :  { %v2915_v48 = vadd.f32 %v3866_v42, %v2875_v45 }
 0x196   :  { %v3886_v49 = vpop.f32.mrb[20].mxu0 }
 0x197   :  { %v3908_v50 = vpop.f32.mrb[20].mxu1  ;;  %v3887_v51 = vpop.f32.mrb[21].mxu0 }
 0x198   :  { %v3909_v52 = vpop.f32.mrb[21].mxu1  ;;  %v3888_v54 = vadd.f32 %v3887_v51, %v3886_v49  ;;  %v3889_v56 = vpop.f32.mrb[22].mxu0 }
 0x199   :  { %v3910_v55 = vadd.f32 %v3909_v52, %v3908_v50  ;;  %v3911_v57 = vpop.f32.mrb[22].mxu1  ;;  %v3890_v58 = vpop.f32.mrb[23].mxu0 }
 0x19a   :  { %v3912_v47 = vpop.f32.mrb[23].mxu1  ;;  %v2955_v59 = vadd.f32 %v3888_v54, %v2915_v48 }
 0x19c   :  { %v2995_v60 = vadd.f32 %v3910_v55, %v2955_v59 }
 0x1b6   :  { %v3930_v61 = vpop.f32.mrb[24].mxu0 }
 0x1b7   :  { %v3952_v62 = vpop.f32.mrb[24].mxu1  ;;  %v3931_v63 = vpop.f32.mrb[25].mxu0 }
 0x1b8   :  { %v3953_v0 = vpop.f32.mrb[25].mxu1  ;;  %v3932_v1 = vadd.f32 %v3931_v63, %v3930_v61  ;;  %v3933_v3 = vpop.f32.mrb[26].mxu0 }
 0x1b9   :  { %v3954_v2 = vadd.f32 %v3953_v0, %v3952_v62  ;;  %v3955_v4 = vpop.f32.mrb[26].mxu1  ;;  %v3934_v5 = vpop.f32.mrb[27].mxu0 }
 0x1ba   :  { %v3956_v6 = vpop.f32.mrb[27].mxu1  ;;  %v3035_v7 = vadd.f32 %v3932_v1, %v2995_v60 }
 0x1bc   :  { %v3075_v8 = vadd.f32 %v3954_v2, %v3035_v7 }
 0x1d6   :  { %v3974_v9 = vpop.f32.mrb[28].mxu0 }
 0x1d7   :  { %v3996_v10 = vpop.f32.mrb[28].mxu1  ;;  %v3975_v11 = vpop.f32.mrb[29].mxu0 }
 0x1d8   :  { %v3976_v12 = vadd.f32 %v3975_v11, %v3974_v9  ;;  %v3997_v13 = vpop.f32.mrb[29].mxu1  ;;  %v3977_v14 = vpop.f32.mrb[30].mxu0 }
 0x1d9   :  { %v3998_v15 = vadd.f32 %v3997_v13, %v3996_v10  ;;  %v3999_v16 = vpop.f32.mrb[30].mxu1  ;;  %v3978_v17 = vpop.f32.mrb[31].mxu0 }
 0x1da   :  { %v3115_v18 = vadd.f32 %v3976_v12, %v3075_v8  ;;  %v4000_v19 = vpop.f32.mrb[31].mxu1 }
 0x1dc   :  { %v3155_v20 = vadd.f32 %v3998_v15, %v3115_v18 }
 0x1de   :  { %v3160_v21 = vmax.f32 %v3155_v20, 0.0 }
 0x1e0   :  { %v3161_v22 = vpack.c.bf16 %v3160_v21, %v3160_v21 }
 0x1e2   :  { %4015 = vmatmul.mubr.msk.bf16.vlgmr.msra.gmra.mrb[32].mxu1 %vm3182_vm1, %v3161_v22 }
 0x1e3   :  { %4027 = vmatpush3.msra.mxu1 %v3282_v23  ;;  %4028 = vmatprep.mubr.msk.f32.mxu1 %vm4324_vm0, %v4323_v53  ;;  %v3649_v53 = vld [vmem:[%s5348_s10] ss:$0 sm:$0xff] }
 0x1ea   :  { %4029 = vmatmul.mubr.msk.f32.vlgmr.msra.gmra.mrb[36].mxu1 %vm3283_vm2, %v3281_v24 }
 0x235   :  { %v3275_v25 = vpop.f32.mrb[32].mxu0 }
 0x236   :  { %v4024_v26 = vpop.f32.mrb[33].mxu0 }
 0x237   :  { %v3278_v27 = vpop.f32.mrb[34].mxu0 }
 0x238   :  { %v4025_v28 = vpop.f32.mrb[35].mxu0 }
 0x2b5   :  { %v3220_v29 = vpop.f32.mrb[32].mxu1 }
 0x2b6   :  { %v3276_v30 = vadd.f32 %v3275_v25, %v3220_v29  ;;  %v4016_v31 = vpop.f32.mrb[33].mxu1 }
 0x2b7   :  { %v3223_v32 = vpop.f32.mrb[34].mxu1 }
 0x2b8   :  { %v4017_v33 = vpop.f32.mrb[35].mxu1 }
 0x2bd   :  { %v3353_v34 = vpop.f32.mrb[36].mxu1 }
 0x2be   :  { %v3357_v35 = vadd.f32 %v3353_v34, %v3276_v30  ;;  %v4030_v36 = vpop.f32.mrb[37].mxu1 }
 0x2c0   :  { %v3365_v37 = vadd.f32 %v3649_v53, %v3357_v35 }
 0x2c2   :  { %v3366_v38 = vmax.f32 %v3365_v37, 0.0 }
 0x2c4   :  { %3367 = vst [vmem:[#allocation2] sm:$0xff] %v3366_v38 }
 0x2c5   :  { %3372 = vsyncadd [#allocation3], 96  ;;  %s4325_s2 = smov [#allocation2]  }
 0x2c6   :  { %s3373_s3 = sshll.u32 %s4325_s2, 4  ;;  %s3374_s3 = int_to_ptr.vmem [resolvable:$true] %s3373_s3 }
 0x2c7   :  { %s4298_s23 = scalar_lea.vmem %s3374_s3, 32  ;;  %s4302_s24 = scalar_lea.vmem %s3374_s3, 128 }
 0x2c8   :  { %p4299_p0 = scmp.ne.s32.totalorder %s3374_s3, %s4298_s23  ;;  %p4303_p1 = scmp.lt.s32.totalorder %s3374_s3, %s3374_s3 }
 0x2c9   :  { %p4304_p2 = scmp.lt.s32.totalorder %s4302_s24, %s4298_s23 }
 0x2cb   :  { %p4305_p3 = por %p4304_p2, %p4303_p1 }
 0x2cd   :  { %p4306_p4 = pnand %p4305_p3, %p4299_p0 }
 0x2cf   :  { %4309 = shalt.err (!%p4306_p4)
}
 0x2d0   :  { %s4310_s10 = scalar_lea.hbm %s5349_s11, 32 }
 0x2d1   :  { %p4311_p5 = scmp.ne.s32.totalorder %s5349_s11, %s4310_s10  ;;  %p4314_p6 = scmp.lt.u32.totalorder %s4310_s10, %s5349_s11 }
 0x2d3   :  { %p4316_p7 = pnand %p4314_p6, %p4311_p5 }
 0x2d5   :  { %4319 = shalt.err (!%p4316_p7)
}
 0x2d6   :  { %s4326_s12 = smov 32   ;;  %s4327_s4 = smov 2  }
 0x2d7   :  { %3379 = dma.vmem_to_hbm [thread:$0]  %s3374_s3, 32, %s5349_s11, [#allocation3], %s4326_s12, %s4326_s12, %s4327_s4  }
 0x2d8   :  { %4320 = dma.done.wait [#allocation3], 128  }
 0x2d9   :  { %4321 = vsyncadd [#allocation3], 4294967168 }
 0x2da   :  { %3383 = vsyncpa [#allocation3], 1 }

</bundles_post_ra>
